<compile_context>
chip_gen: v7x
topology: tpu7x:2x2x1
jax: 0.10.0
libtpu: 0.0.40
codegen_flags: <defaults>
</compile_context>

<pallas_src>
import jax
import jax.numpy as jnp
import numpy as np
from jax.experimental import pallas as pl
from jax.experimental.pallas import tpu as pltpu


def _sigmoid(x):
    # Exact sigmoid via tanh: runs on the EUP slot, no divide, no inf risk.
    return 0.5 * (jnp.tanh(0.5 * x) + 1.0)


def _make_kernel(num_layers: int, hidden_size: int, seq_len: int,
                 batch_padded: int, d_pad: int):
    H = hidden_size
    T = seq_len
    Bp = batch_padded

    def kernel(x_ref, w_ih_ref, w_hh_ref, b_ref, w_fc_ref, b_fc_ref,
               out_ref, seq_buf, gates_buf):
        # x_ref:     (T*Bp, Dpad)   time-major, sublane-padded batch
        # w_ih_ref:  (L, Dpad, 4H)  stacked, pre-transposed, zero-padded rows
        # w_hh_ref:  (L, H, 4H)     stacked, pre-transposed
        # b_ref:     (L, 1, 4H)     b_ih + b_hh, stacked
        # w_fc_ref:  (H, C), b_fc_ref: (1, C)
        # seq_buf:   (T*Bp, Dpad)   inter-layer activations (scratch)
        # gates_buf: (T*Bp, 4H)     hoisted per-layer input projection (scratch)
        h_last = None
        for l in range(num_layers):
            # Weight reads hoisted out of the time loop (one VMEM load each).
            w_ih_T = w_ih_ref[l]      # (Dpad, 4H)
            w_hh_T = w_hh_ref[l]      # (H, 4H)
            b = b_ref[l]              # (1, 4H)

            in_flat = x_ref[...] if l == 0 else seq_buf[...]   # (T*Bp, Dpad)

            # Hoisted, batched input projection for the whole sequence with the
            # bias folded in: one (T*Bp, Dpad) @ (Dpad, 4H) MXU matmul per layer
            # instead of T tiny ones inside the recurrence.
            gates_buf[...] = (
                jnp.dot(in_flat, w_ih_T, preferred_element_type=jnp.float32) + b
            )

            is_last = l == num_layers - 1
            h = jnp.zeros((Bp, H), jnp.float32)
            c = jnp.zeros((Bp, H), jnp.float32)
            hs = []

            # Serial recurrence, fully unrolled (T static and small); h/c are
            # carried as values so no VMEM loads/stores sit on the chain.
            for t in range(T):
                gates = gates_buf[t * Bp:(t + 1) * Bp, :] + jnp.dot(
                    h, w_hh_T, preferred_element_type=jnp.float32
                )  # (Bp, 4H)
                # Full-width nonlinearities: 2 EUP pushes per step instead of 4.
                sig_all = _sigmoid(gates)       # used for i, f, o lanes
                tanh_all = jnp.tanh(gates)      # used for g lanes
                i_g = sig_all[:, 0:H]
                f_g = sig_all[:, H:2 * H]
                g_g = tanh_all[:, 2 * H:3 * H]
                o_g = sig_all[:, 3 * H:4 * H]
                c = f_g * c + i_g * g_g
                h = o_g * jnp.tanh(c)
                if not is_last:
                    hs.append(h)

            if not is_last:
                # Batched inter-layer writeback: single stacked store after the
                # recurrence, off the dependent chain.  (Safe: gates_buf for the
                # next layer is computed from seq_buf only after this store.)
                if d_pad > H:
                    zpad = jnp.zeros((Bp, d_pad - H), jnp.float32)
                    hs = [jnp.concatenate([hv, zpad], axis=1) for hv in hs]
                seq_buf[...] = jnp.concatenate(hs, axis=0)
            h_last = h

        # fc(last_time_step): logits = h_{T-1} @ W_fc^T + b_fc
        logits = (
            jnp.dot(h_last, w_fc_ref[...], preferred_element_type=jnp.float32)
            + b_fc_ref[...]
        )
        out_ref[...] = logits.astype(out_ref.dtype)

    return kernel


def lstm_model_forward(x, lstm_params, w_fc, b_fc):
    """x: (B, T, D) float32 (PyTorch batch_first).  Returns (B, num_classes)."""
    B, T, D = x.shape
    num_layers = len(lstm_params)
    H = lstm_params[0][1].shape[1]  # w_hh: (4H, H)
    C = w_fc.shape[0]

    SUBLANE = 8
    Bp = max(SUBLANE, ((B + SUBLANE - 1) // SUBLANE) * SUBLANE)  # pad batch to sublane group
    Dpad = max(D, H)  # common input-feature width for all layers (zero-padded)

    # Glue (free, outside the kernel): batch pad, time-major + flatten
    # (T, Bp, D) -> (T*Bp, Dpad); weights pre-transposed, stacked per layer;
    # the two biases pre-summed.
    x32 = x.astype(jnp.float32)
    x_p = jnp.zeros((Bp, T, D), jnp.float32).at[:B].set(x32)
    x_flat = jnp.transpose(x_p, (1, 0, 2)).reshape(T * Bp, D)
    if Dpad > D:
        x_flat = jnp.pad(x_flat, ((0, 0), (0, Dpad - D)))

    w_ih_list, w_hh_list, b_list = [], [], []
    for (w_ih, w_hh, b_ih, b_hh) in lstm_params:
        w_ih_T = jnp.transpose(w_ih).astype(jnp.float32)       # (Din, 4H)
        din = w_ih_T.shape[0]
        if Dpad > din:
            w_ih_T = jnp.pad(w_ih_T, ((0, Dpad - din), (0, 0)))  # zero rows: no effect
        w_ih_list.append(w_ih_T)
        w_hh_list.append(jnp.transpose(w_hh).astype(jnp.float32))            # (H, 4H)
        b_list.append((b_ih + b_hh).reshape(1, -1).astype(jnp.float32))      # (1, 4H)
    w_ih_stack = jnp.stack(w_ih_list)   # (L, Dpad, 4H)
    w_hh_stack = jnp.stack(w_hh_list)   # (L, H, 4H)
    b_stack = jnp.stack(b_list)         # (L, 1, 4H)
    w_fc_T = jnp.transpose(w_fc).astype(jnp.float32)            # (H, C)
    b_fc_r = b_fc.reshape(1, -1).astype(jnp.float32)            # (1, C)

    kernel = _make_kernel(num_layers, H, T, Bp, Dpad)

    vmem_spec = pl.BlockSpec(memory_space=pltpu.MemorySpace.VMEM)
    out_p = pl.pallas_call(
        kernel,
        out_shape=jax.ShapeDtypeStruct((Bp, C), jnp.float32),
        in_specs=[vmem_spec] * 6,
        out_specs=vmem_spec,
        scratch_shapes=[
            pltpu.VMEM((T * Bp, Dpad), jnp.float32),      # inter-layer sequence buf
            pltpu.VMEM((T * Bp, 4 * H), jnp.float32),     # per-layer gate pre-acts
        ],
    )(x_flat, w_ih_stack, w_hh_stack, b_stack, w_fc_T, b_fc_r)
    return out_p[:B]


def reference_forward(x, lstm_params, w_fc, b_fc):
    """Pure-JAX reference matching torch.nn.LSTM + Linear semantics."""
    B, T, _ = x.shape
    inp = x.astype(jnp.float32)
    for (w_ih, w_hh, b_ih, b_hh) in lstm_params:
        H = w_hh.shape[1]
        h = jnp.zeros((B, H), jnp.float32)
        c = jnp.zeros((B, H), jnp.float32)
        outs = []
        for t in range(T):
            x_t = inp[:, t, :]
            gates = x_t @ w_ih.T + h @ w_hh.T + b_ih + b_hh
            i_g = jax.nn.sigmoid(gates[:, 0:H])
            f_g = jax.nn.sigmoid(gates[:, H:2 * H])
            g_g = jnp.tanh(gates[:, 2 * H:3 * H])
            o_g = jax.nn.sigmoid(gates[:, 3 * H:4 * H])
            c = f_g * c + i_g * g_g
            h = o_g * jnp.tanh(c)
            outs.append(h)
        inp = jnp.stack(outs, axis=1)
    return inp[:, -1, :] @ w_fc.T + b_fc


if __name__ == "__main__":
    # Small shapes consistent with the module's forward:
    #   x: (batch, window_size, input_size)
    batch, seq_len, input_size = 2, 8, 4
    hidden_size, num_layers, num_classes = 32, 2, 3

    key = jax.random.PRNGKey(0)
    key, kx = jax.random.split(key)
    x = jax.random.normal(kx, (batch, seq_len, input_size), dtype=jnp.float32)

    # Deterministic parameter init, PyTorch-style U(-1/sqrt(H), 1/sqrt(H)).
    bound = 1.0 / np.sqrt(hidden_size)
    lstm_params = []
    for l in range(num_layers):
        din = input_size if l == 0 else hidden_size
        key, k1, k2, k3, k4 = jax.random.split(key, 5)
        w_ih = jax.random.uniform(k1, (4 * hidden_size, din), jnp.float32, -bound, bound)
        w_hh = jax.random.uniform(k2, (4 * hidden_size, hidden_size), jnp.float32, -bound, bound)
        b_ih = jax.random.uniform(k3, (4 * hidden_size,), jnp.float32, -bound, bound)
        b_hh = jax.random.uniform(k4, (4 * hidden_size,), jnp.float32, -bound, bound)
        lstm_params.append((w_ih, w_hh, b_ih, b_hh))
    key, k5, k6 = jax.random.split(key, 3)
    w_fc = jax.random.uniform(k5, (num_classes, hidden_size), jnp.float32, -bound, bound)
    b_fc = jax.random.uniform(k6, (num_classes,), jnp.float32, -bound, bound)

    out = lstm_model_forward(x, lstm_params, w_fc, b_fc)
    out = jax.block_until_ready(out)

    ref = jax.block_until_ready(reference_forward(x, lstm_params, w_fc, b_fc))
    np.testing.assert_allclose(np.asarray(out), np.asarray(ref), rtol=2e-3, atol=2e-3)

    print("KERNEL_OK")
</pallas_src>

<mosaic_0001>
module attributes {stable_mosaic.version = 11 : i64} {
  func.func @kernel(%arg0: memref<64x32xf32, #tpu.memory_space<vmem>>, %arg1: memref<2x32x128xf32, #tpu.memory_space<vmem>>, %arg2: memref<2x32x128xf32, #tpu.memory_space<vmem>>, %arg3: memref<2x1x128xf32, #tpu.memory_space<vmem>>, %arg4: memref<32x3xf32, #tpu.memory_space<vmem>>, %arg5: memref<1x3xf32, #tpu.memory_space<vmem>>, %arg6: memref<8x3xf32, #tpu.memory_space<vmem>>, %arg7: memref<64x32xf32, #tpu.memory_space<vmem>>, %arg8: memref<64x128xf32, #tpu.memory_space<vmem>>) attributes {dimension_semantics = [], scalar_prefetch = 0 : i64, scratch_operands = 2 : i64, tpu.core_type = #tpu.core_type<tc>} {
    %c0 = arith.constant 0 : index
    %c0_0 = arith.constant 0 : index
    %c0_1 = arith.constant 0 : index
    %0 = vector.load %arg1[%c0, %c0_0, %c0_1] : memref<2x32x128xf32, #tpu.memory_space<vmem>>, vector<1x32x128xf32>
    %1 = vector.shape_cast %0 : vector<1x32x128xf32> to vector<32x128xf32>
    %c0_2 = arith.constant 0 : index
    %c0_3 = arith.constant 0 : index
    %c0_4 = arith.constant 0 : index
    %2 = vector.load %arg2[%c0_2, %c0_3, %c0_4] : memref<2x32x128xf32, #tpu.memory_space<vmem>>, vector<1x32x128xf32>
    %3 = vector.shape_cast %2 : vector<1x32x128xf32> to vector<32x128xf32>
    %c0_5 = arith.constant 0 : index
    %c0_6 = arith.constant 0 : index
    %c0_7 = arith.constant 0 : index
    %4 = vector.load %arg3[%c0_5, %c0_6, %c0_7] : memref<2x1x128xf32, #tpu.memory_space<vmem>>, vector<1x1x128xf32>
    %5 = vector.shape_cast %4 : vector<1x1x128xf32> to vector<1x128xf32>
    %c0_8 = arith.constant 0 : index
    %c0_9 = arith.constant 0 : index
    %6 = vector.load %arg0[%c0_8, %c0_9] : memref<64x32xf32, #tpu.memory_space<vmem>>, vector<64x32xf32>
    %cst = arith.constant dense<0.000000e+00> : vector<64x128xf32>
    %7 = tpu.matmul %6, %1, %cst {dimension_numbers = #tpu.dot_dimension_numbers<[1], [0], [0], [1], [0, 0, 1, 1], [], []>} : vector<64x32xf32>, vector<32x128xf32>, vector<64x128xf32> -> vector<64x128xf32>
    %8 = vector.broadcast %5 : vector<1x128xf32> to vector<64x128xf32>
    %9 = arith.addf %7, %8 : vector<64x128xf32>
    %c0_10 = arith.constant 0 : index
    %c0_11 = arith.constant 0 : index
    %10 = vector.load %arg8[%c0_10, %c0_11] : memref<64x128xf32, #tpu.memory_space<vmem>>, vector<64x128xf32>
    tpu.vector_store %arg8[%c0_10, %c0_11], %9 {strides = array<i32>} : memref<64x128xf32, #tpu.memory_space<vmem>>, vector<64x128xf32>,
    %cst_12 = arith.constant 0.000000e+00 : f32
    %11 = vector.broadcast %cst_12 : f32 to vector<8x32xf32>
    %cst_13 = arith.constant 0.000000e+00 : f32
    %12 = vector.broadcast %cst_13 : f32 to vector<8x32xf32>
    %c0_14 = arith.constant 0 : index
    %c0_15 = arith.constant 0 : index
    %13 = vector.load %arg8[%c0_14, %c0_15] : memref<64x128xf32, #tpu.memory_space<vmem>>, vector<8x128xf32>
    %cst_16 = arith.constant dense<0.000000e+00> : vector<8x128xf32>
    %14 = tpu.matmul %11, %3, %cst_16 {dimension_numbers = #tpu.dot_dimension_numbers<[1], [0], [0], [1], [0, 0, 1, 1], [], []>} : vector<8x32xf32>, vector<32x128xf32>, vector<8x128xf32> -> vector<8x128xf32>
    %15 = arith.addf %13, %14 : vector<8x128xf32>
    %cst_17 = arith.constant 5.000000e-01 : f32
    %16 = vector.broadcast %cst_17 : f32 to vector<8x128xf32>
    %17 = arith.mulf %16, %15 : vector<8x128xf32>
    %18 = math.tanh %17 : vector<8x128xf32>
    %cst_18 = arith.constant 1.000000e+00 : f32
    %19 = vector.broadcast %cst_18 : f32 to vector<8x128xf32>
    %20 = arith.addf %18, %19 : vector<8x128xf32>
    %cst_19 = arith.constant 5.000000e-01 : f32
    %21 = vector.broadcast %cst_19 : f32 to vector<8x128xf32>
    %22 = arith.mulf %21, %20 : vector<8x128xf32>
    %23 = math.tanh %15 : vector<8x128xf32>
    %24 = vector.extract_strided_slice %22 {offsets = [0, 0], sizes = [8, 32], strides = [1, 1]} : vector<8x128xf32> to vector<8x32xf32>
    %25 = vector.extract_strided_slice %22 {offsets = [0, 32], sizes = [8, 32], strides = [1, 1]} : vector<8x128xf32> to vector<8x32xf32>
    %26 = vector.extract_strided_slice %23 {offsets = [0, 64], sizes = [8, 32], strides = [1, 1]} : vector<8x128xf32> to vector<8x32xf32>
    %27 = vector.extract_strided_slice %22 {offsets = [0, 96], sizes = [8, 32], strides = [1, 1]} : vector<8x128xf32> to vector<8x32xf32>
    %28 = arith.mulf %25, %12 : vector<8x32xf32>
    %29 = arith.mulf %24, %26 : vector<8x32xf32>
    %30 = arith.addf %28, %29 : vector<8x32xf32>
    %31 = math.tanh %30 : vector<8x32xf32>
    %32 = arith.mulf %27, %31 : vector<8x32xf32>
    %c8 = arith.constant 8 : index
    %c0_20 = arith.constant 0 : index
    %33 = vector.load %arg8[%c8, %c0_20] : memref<64x128xf32, #tpu.memory_space<vmem>>, vector<8x128xf32>
    %cst_21 = arith.constant dense<0.000000e+00> : vector<8x128xf32>
    %34 = tpu.matmul %32, %3, %cst_21 {dimension_numbers = #tpu.dot_dimension_numbers<[1], [0], [0], [1], [0, 0, 1, 1], [], []>} : vector<8x32xf32>, vector<32x128xf32>, vector<8x128xf32> -> vector<8x128xf32>
    %35 = arith.addf %33, %34 : vector<8x128xf32>
    %cst_22 = arith.constant 5.000000e-01 : f32
    %36 = vector.broadcast %cst_22 : f32 to vector<8x128xf32>
    %37 = arith.mulf %36, %35 : vector<8x128xf32>
    %38 = math.tanh %37 : vector<8x128xf32>
    %cst_23 = arith.constant 1.000000e+00 : f32
    %39 = vector.broadcast %cst_23 : f32 to vector<8x128xf32>
    %40 = arith.addf %38, %39 : vector<8x128xf32>
    %cst_24 = arith.constant 5.000000e-01 : f32
    %41 = vector.broadcast %cst_24 : f32 to vector<8x128xf32>
    %42 = arith.mulf %41, %40 : vector<8x128xf32>
    %43 = math.tanh %35 : vector<8x128xf32>
    %44 = vector.extract_strided_slice %42 {offsets = [0, 0], sizes = [8, 32], strides = [1, 1]} : vector<8x128xf32> to vector<8x32xf32>
    %45 = vector.extract_strided_slice %42 {offsets = [0, 32], sizes = [8, 32], strides = [1, 1]} : vector<8x128xf32> to vector<8x32xf32>
    %46 = vector.extract_strided_slice %43 {offsets = [0, 64], sizes = [8, 32], strides = [1, 1]} : vector<8x128xf32> to vector<8x32xf32>
    %47 = vector.extract_strided_slice %42 {offsets = [0, 96], sizes = [8, 32], strides = [1, 1]} : vector<8x128xf32> to vector<8x32xf32>
    %48 = arith.mulf %45, %30 : vector<8x32xf32>
    %49 = arith.mulf %44, %46 : vector<8x32xf32>
    %50 = arith.addf %48, %49 : vector<8x32xf32>
    %51 = math.tanh %50 : vector<8x32xf32>
    %52 = arith.mulf %47, %51 : vector<8x32xf32>
    %c16 = arith.constant 16 : index
    %c0_25 = arith.constant 0 : index
    %53 = vector.load %arg8[%c16, %c0_25] : memref<64x128xf32, #tpu.memory_space<vmem>>, vector<8x128xf32>
    %cst_26 = arith.constant dense<0.000000e+00> : vector<8x128xf32>
    %54 = tpu.matmul %52, %3, %cst_26 {dimension_numbers = #tpu.dot_dimension_numbers<[1], [0], [0], [1], [0, 0, 1, 1], [], []>} : vector<8x32xf32>, vector<32x128xf32>, vector<8x128xf32> -> vector<8x128xf32>
    %55 = arith.addf %53, %54 : vector<8x128xf32>
    %cst_27 = arith.constant 5.000000e-01 : f32
    %56 = vector.broadcast %cst_27 : f32 to vector<8x128xf32>
    %57 = arith.mulf %56, %55 : vector<8x128xf32>
    %58 = math.tanh %57 : vector<8x128xf32>
    %cst_28 = arith.constant 1.000000e+00 : f32
    %59 = vector.broadcast %cst_28 : f32 to vector<8x128xf32>
    %60 = arith.addf %58, %59 : vector<8x128xf32>
    %cst_29 = arith.constant 5.000000e-01 : f32
    %61 = vector.broadcast %cst_29 : f32 to vector<8x128xf32>
    %62 = arith.mulf %61, %60 : vector<8x128xf32>
    %63 = math.tanh %55 : vector<8x128xf32>
    %64 = vector.extract_strided_slice %62 {offsets = [0, 0], sizes = [8, 32], strides = [1, 1]} : vector<8x128xf32> to vector<8x32xf32>
    %65 = vector.extract_strided_slice %62 {offsets = [0, 32], sizes = [8, 32], strides = [1, 1]} : vector<8x128xf32> to vector<8x32xf32>
    %66 = vector.extract_strided_slice %63 {offsets = [0, 64], sizes = [8, 32], strides = [1, 1]} : vector<8x128xf32> to vector<8x32xf32>
    %67 = vector.extract_strided_slice %62 {offsets = [0, 96], sizes = [8, 32], strides = [1, 1]} : vector<8x128xf32> to vector<8x32xf32>
    %68 = arith.mulf %65, %50 : vector<8x32xf32>
    %69 = arith.mulf %64, %66 : vector<8x32xf32>
    %70 = arith.addf %68, %69 : vector<8x32xf32>
    %71 = math.tanh %70 : vector<8x32xf32>
    %72 = arith.mulf %67, %71 : vector<8x32xf32>
    %c24 = arith.constant 24 : index
    %c0_30 = arith.constant 0 : index
    %73 = vector.load %arg8[%c24, %c0_30] : memref<64x128xf32, #tpu.memory_space<vmem>>, vector<8x128xf32>
    %cst_31 = arith.constant dense<0.000000e+00> : vector<8x128xf32>
    %74 = tpu.matmul %72, %3, %cst_31 {dimension_numbers = #tpu.dot_dimension_numbers<[1], [0], [0], [1], [0, 0, 1, 1], [], []>} : vector<8x32xf32>, vector<32x128xf32>, vector<8x128xf32> -> vector<8x128xf32>
    %75 = arith.addf %73, %74 : vector<8x128xf32>
    %cst_32 = arith.constant 5.000000e-01 : f32
    %76 = vector.broadcast %cst_32 : f32 to vector<8x128xf32>
    %77 = arith.mulf %76, %75 : vector<8x128xf32>
    %78 = math.tanh %77 : vector<8x128xf32>
    %cst_33 = arith.constant 1.000000e+00 : f32
    %79 = vector.broadcast %cst_33 : f32 to vector<8x128xf32>
    %80 = arith.addf %78, %79 : vector<8x128xf32>
    %cst_34 = arith.constant 5.000000e-01 : f32
    %81 = vector.broadcast %cst_34 : f32 to vector<8x128xf32>
    %82 = arith.mulf %81, %80 : vector<8x128xf32>
    %83 = math.tanh %75 : vector<8x128xf32>
    %84 = vector.extract_strided_slice %82 {offsets = [0, 0], sizes = [8, 32], strides = [1, 1]} : vector<8x128xf32> to vector<8x32xf32>
    %85 = vector.extract_strided_slice %82 {offsets = [0, 32], sizes = [8, 32], strides = [1, 1]} : vector<8x128xf32> to vector<8x32xf32>
    %86 = vector.extract_strided_slice %83 {offsets = [0, 64], sizes = [8, 32], strides = [1, 1]} : vector<8x128xf32> to vector<8x32xf32>
    %87 = vector.extract_strided_slice %82 {offsets = [0, 96], sizes = [8, 32], strides = [1, 1]} : vector<8x128xf32> to vector<8x32xf32>
    %88 = arith.mulf %85, %70 : vector<8x32xf32>
    %89 = arith.mulf %84, %86 : vector<8x32xf32>
    %90 = arith.addf %88, %89 : vector<8x32xf32>
    %91 = math.tanh %90 : vector<8x32xf32>
    %92 = arith.mulf %87, %91 : vector<8x32xf32>
    %c32 = arith.constant 32 : index
    %c0_35 = arith.constant 0 : index
    %93 = vector.load %arg8[%c32, %c0_35] : memref<64x128xf32, #tpu.memory_space<vmem>>, vector<8x128xf32>
    %cst_36 = arith.constant dense<0.000000e+00> : vector<8x128xf32>
    %94 = tpu.matmul %92, %3, %cst_36 {dimension_numbers = #tpu.dot_dimension_numbers<[1], [0], [0], [1], [0, 0, 1, 1], [], []>} : vector<8x32xf32>, vector<32x128xf32>, vector<8x128xf32> -> vector<8x128xf32>
    %95 = arith.addf %93, %94 : vector<8x128xf32>
    %cst_37 = arith.constant 5.000000e-01 : f32
    %96 = vector.broadcast %cst_37 : f32 to vector<8x128xf32>
    %97 = arith.mulf %96, %95 : vector<8x128xf32>
    %98 = math.tanh %97 : vector<8x128xf32>
    %cst_38 = arith.constant 1.000000e+00 : f32
    %99 = vector.broadcast %cst_38 : f32 to vector<8x128xf32>
    %100 = arith.addf %98, %99 : vector<8x128xf32>
    %cst_39 = arith.constant 5.000000e-01 : f32
    %101 = vector.broadcast %cst_39 : f32 to vector<8x128xf32>
    %102 = arith.mulf %101, %100 : vector<8x128xf32>
    %103 = math.tanh %95 : vector<8x128xf32>
    %104 = vector.extract_strided_slice %102 {offsets = [0, 0], sizes = [8, 32], strides = [1, 1]} : vector<8x128xf32> to vector<8x32xf32>
    %105 = vector.extract_strided_slice %102 {offsets = [0, 32], sizes = [8, 32], strides = [1, 1]} : vector<8x128xf32> to vector<8x32xf32>
    %106 = vector.extract_strided_slice %103 {offsets = [0, 64], sizes = [8, 32], strides = [1, 1]} : vector<8x128xf32> to vector<8x32xf32>
    %107 = vector.extract_strided_slice %102 {offsets = [0, 96], sizes = [8, 32], strides = [1, 1]} : vector<8x128xf32> to vector<8x32xf32>
    %108 = arith.mulf %105, %90 : vector<8x32xf32>
    %109 = arith.mulf %104, %106 : vector<8x32xf32>
    %110 = arith.addf %108, %109 : vector<8x32xf32>
    %111 = math.tanh %110 : vector<8x32xf32>
    %112 = arith.mulf %107, %111 : vector<8x32xf32>
    %c40 = arith.constant 40 : index
    %c0_40 = arith.constant 0 : index
    %113 = vector.load %arg8[%c40, %c0_40] : memref<64x128xf32, #tpu.memory_space<vmem>>, vector<8x128xf32>
    %cst_41 = arith.constant dense<0.000000e+00> : vector<8x128xf32>
    %114 = tpu.matmul %112, %3, %cst_41 {dimension_numbers = #tpu.dot_dimension_numbers<[1], [0], [0], [1], [0, 0, 1, 1], [], []>} : vector<8x32xf32>, vector<32x128xf32>, vector<8x128xf32> -> vector<8x128xf32>
    %115 = arith.addf %113, %114 : vector<8x128xf32>
    %cst_42 = arith.constant 5.000000e-01 : f32
    %116 = vector.broadcast %cst_42 : f32 to vector<8x128xf32>
    %117 = arith.mulf %116, %115 : vector<8x128xf32>
    %118 = math.tanh %117 : vector<8x128xf32>
    %cst_43 = arith.constant 1.000000e+00 : f32
    %119 = vector.broadcast %cst_43 : f32 to vector<8x128xf32>
    %120 = arith.addf %118, %119 : vector<8x128xf32>
    %cst_44 = arith.constant 5.000000e-01 : f32
    %121 = vector.broadcast %cst_44 : f32 to vector<8x128xf32>
    %122 = arith.mulf %121, %120 : vector<8x128xf32>
    %123 = math.tanh %115 : vector<8x128xf32>
    %124 = vector.extract_strided_slice %122 {offsets = [0, 0], sizes = [8, 32], strides = [1, 1]} : vector<8x128xf32> to vector<8x32xf32>
    %125 = vector.extract_strided_slice %122 {offsets = [0, 32], sizes = [8, 32], strides = [1, 1]} : vector<8x128xf32> to vector<8x32xf32>
    %126 = vector.extract_strided_slice %123 {offsets = [0, 64], sizes = [8, 32], strides = [1, 1]} : vector<8x128xf32> to vector<8x32xf32>
    %127 = vector.extract_strided_slice %122 {offsets = [0, 96], sizes = [8, 32], strides = [1, 1]} : vector<8x128xf32> to vector<8x32xf32>
    %128 = arith.mulf %125, %110 : vector<8x32xf32>
    %129 = arith.mulf %124, %126 : vector<8x32xf32>
    %130 = arith.addf %128, %129 : vector<8x32xf32>
    %131 = math.tanh %130 : vector<8x32xf32>
    %132 = arith.mulf %127, %131 : vector<8x32xf32>
    %c48 = arith.constant 48 : index
    %c0_45 = arith.constant 0 : index
    %133 = vector.load %arg8[%c48, %c0_45] : memref<64x128xf32, #tpu.memory_space<vmem>>, vector<8x128xf32>
    %cst_46 = arith.constant dense<0.000000e+00> : vector<8x128xf32>
    %134 = tpu.matmul %132, %3, %cst_46 {dimension_numbers = #tpu.dot_dimension_numbers<[1], [0], [0], [1], [0, 0, 1, 1], [], []>} : vector<8x32xf32>, vector<32x128xf32>, vector<8x128xf32> -> vector<8x128xf32>
    %135 = arith.addf %133, %134 : vector<8x128xf32>
    %cst_47 = arith.constant 5.000000e-01 : f32
    %136 = vector.broadcast %cst_47 : f32 to vector<8x128xf32>
    %137 = arith.mulf %136, %135 : vector<8x128xf32>
    %138 = math.tanh %137 : vector<8x128xf32>
    %cst_48 = arith.constant 1.000000e+00 : f32
    %139 = vector.broadcast %cst_48 : f32 to vector<8x128xf32>
    %140 = arith.addf %138, %139 : vector<8x128xf32>
    %cst_49 = arith.constant 5.000000e-01 : f32
    %141 = vector.broadcast %cst_49 : f32 to vector<8x128xf32>
    %142 = arith.mulf %141, %140 : vector<8x128xf32>
    %143 = math.tanh %135 : vector<8x128xf32>
    %144 = vector.extract_strided_slice %142 {offsets = [0, 0], sizes = [8, 32], strides = [1, 1]} : vector<8x128xf32> to vector<8x32xf32>
    %145 = vector.extract_strided_slice %142 {offsets = [0, 32], sizes = [8, 32], strides = [1, 1]} : vector<8x128xf32> to vector<8x32xf32>
    %146 = vector.extract_strided_slice %143 {offsets = [0, 64], sizes = [8, 32], strides = [1, 1]} : vector<8x128xf32> to vector<8x32xf32>
    %147 = vector.extract_strided_slice %142 {offsets = [0, 96], sizes = [8, 32], strides = [1, 1]} : vector<8x128xf32> to vector<8x32xf32>
    %148 = arith.mulf %145, %130 : vector<8x32xf32>
    %149 = arith.mulf %144, %146 : vector<8x32xf32>
    %150 = arith.addf %148, %149 : vector<8x32xf32>
    %151 = math.tanh %150 : vector<8x32xf32>
    %152 = arith.mulf %147, %151 : vector<8x32xf32>
    %c56 = arith.constant 56 : index
    %c0_50 = arith.constant 0 : index
    %153 = vector.load %arg8[%c56, %c0_50] : memref<64x128xf32, #tpu.memory_space<vmem>>, vector<8x128xf32>
    %cst_51 = arith.constant dense<0.000000e+00> : vector<8x128xf32>
    %154 = tpu.matmul %152, %3, %cst_51 {dimension_numbers = #tpu.dot_dimension_numbers<[1], [0], [0], [1], [0, 0, 1, 1], [], []>} : vector<8x32xf32>, vector<32x128xf32>, vector<8x128xf32> -> vector<8x128xf32>
    %155 = arith.addf %153, %154 : vector<8x128xf32>
    %cst_52 = arith.constant 5.000000e-01 : f32
    %156 = vector.broadcast %cst_52 : f32 to vector<8x128xf32>
    %157 = arith.mulf %156, %155 : vector<8x128xf32>
    %158 = math.tanh %157 : vector<8x128xf32>
    %cst_53 = arith.constant 1.000000e+00 : f32
    %159 = vector.broadcast %cst_53 : f32 to vector<8x128xf32>
    %160 = arith.addf %158, %159 : vector<8x128xf32>
    %cst_54 = arith.constant 5.000000e-01 : f32
    %161 = vector.broadcast %cst_54 : f32 to vector<8x128xf32>
    %162 = arith.mulf %161, %160 : vector<8x128xf32>
    %163 = math.tanh %155 : vector<8x128xf32>
    %164 = vector.extract_strided_slice %162 {offsets = [0, 0], sizes = [8, 32], strides = [1, 1]} : vector<8x128xf32> to vector<8x32xf32>
    %165 = vector.extract_strided_slice %162 {offsets = [0, 32], sizes = [8, 32], strides = [1, 1]} : vector<8x128xf32> to vector<8x32xf32>
    %166 = vector.extract_strided_slice %163 {offsets = [0, 64], sizes = [8, 32], strides = [1, 1]} : vector<8x128xf32> to vector<8x32xf32>
    %167 = vector.extract_strided_slice %162 {offsets = [0, 96], sizes = [8, 32], strides = [1, 1]} : vector<8x128xf32> to vector<8x32xf32>
    %168 = arith.mulf %165, %150 : vector<8x32xf32>
    %169 = arith.mulf %164, %166 : vector<8x32xf32>
    %170 = arith.addf %168, %169 : vector<8x32xf32>
    %171 = math.tanh %170 : vector<8x32xf32>
    %172 = arith.mulf %167, %171 : vector<8x32xf32>
    %173 = tpu.concatenate %32, %52, %72, %92, %112, %132, %152, %172 in 0 : vector<8x32xf32>, vector<8x32xf32>, vector<8x32xf32>, vector<8x32xf32>, vector<8x32xf32>, vector<8x32xf32>, vector<8x32xf32>, vector<8x32xf32> -> vector<64x32xf32>
    %c0_55 = arith.constant 0 : index
    %c0_56 = arith.constant 0 : index
    %174 = vector.load %arg7[%c0_55, %c0_56] : memref<64x32xf32, #tpu.memory_space<vmem>>, vector<64x32xf32>
    tpu.vector_store %arg7[%c0_55, %c0_56], %173 {strides = array<i32>} : memref<64x32xf32, #tpu.memory_space<vmem>>, vector<64x32xf32>,
    %c1 = arith.constant 1 : index
    %c0_57 = arith.constant 0 : index
    %c0_58 = arith.constant 0 : index
    %175 = vector.load %arg1[%c1, %c0_57, %c0_58] : memref<2x32x128xf32, #tpu.memory_space<vmem>>, vector<1x32x128xf32>
    %176 = vector.shape_cast %175 : vector<1x32x128xf32> to vector<32x128xf32>
    %c1_59 = arith.constant 1 : index
    %c0_60 = arith.constant 0 : index
    %c0_61 = arith.constant 0 : index
    %177 = vector.load %arg2[%c1_59, %c0_60, %c0_61] : memref<2x32x128xf32, #tpu.memory_space<vmem>>, vector<1x32x128xf32>
    %178 = vector.shape_cast %177 : vector<1x32x128xf32> to vector<32x128xf32>
    %c1_62 = arith.constant 1 : index
    %c0_63 = arith.constant 0 : index
    %c0_64 = arith.constant 0 : index
    %179 = vector.load %arg3[%c1_62, %c0_63, %c0_64] : memref<2x1x128xf32, #tpu.memory_space<vmem>>, vector<1x1x128xf32>
    %180 = vector.shape_cast %179 : vector<1x1x128xf32> to vector<1x128xf32>
    %c0_65 = arith.constant 0 : index
    %c0_66 = arith.constant 0 : index
    %181 = vector.load %arg7[%c0_65, %c0_66] : memref<64x32xf32, #tpu.memory_space<vmem>>, vector<64x32xf32>
    %cst_67 = arith.constant dense<0.000000e+00> : vector<64x128xf32>
    %182 = tpu.matmul %181, %176, %cst_67 {dimension_numbers = #tpu.dot_dimension_numbers<[1], [0], [0], [1], [0, 0, 1, 1], [], []>} : vector<64x32xf32>, vector<32x128xf32>, vector<64x128xf32> -> vector<64x128xf32>
    %183 = vector.broadcast %180 : vector<1x128xf32> to vector<64x128xf32>
    %184 = arith.addf %182, %183 : vector<64x128xf32>
    %c0_68 = arith.constant 0 : index
    %c0_69 = arith.constant 0 : index
    %185 = vector.load %arg8[%c0_68, %c0_69] : memref<64x128xf32, #tpu.memory_space<vmem>>, vector<64x128xf32>
    tpu.vector_store %arg8[%c0_68, %c0_69], %184 {strides = array<i32>} : memref<64x128xf32, #tpu.memory_space<vmem>>, vector<64x128xf32>,
    %cst_70 = arith.constant 0.000000e+00 : f32
    %186 = vector.broadcast %cst_70 : f32 to vector<8x32xf32>
    %cst_71 = arith.constant 0.000000e+00 : f32
    %187 = vector.broadcast %cst_71 : f32 to vector<8x32xf32>
    %c0_72 = arith.constant 0 : index
    %c0_73 = arith.constant 0 : index
    %188 = vector.load %arg8[%c0_72, %c0_73] : memref<64x128xf32, #tpu.memory_space<vmem>>, vector<8x128xf32>
    %cst_74 = arith.constant dense<0.000000e+00> : vector<8x128xf32>
    %189 = tpu.matmul %186, %178, %cst_74 {dimension_numbers = #tpu.dot_dimension_numbers<[1], [0], [0], [1], [0, 0, 1, 1], [], []>} : vector<8x32xf32>, vector<32x128xf32>, vector<8x128xf32> -> vector<8x128xf32>
    %190 = arith.addf %188, %189 : vector<8x128xf32>
    %cst_75 = arith.constant 5.000000e-01 : f32
    %191 = vector.broadcast %cst_75 : f32 to vector<8x128xf32>
    %192 = arith.mulf %191, %190 : vector<8x128xf32>
    %193 = math.tanh %192 : vector<8x128xf32>
    %cst_76 = arith.constant 1.000000e+00 : f32
    %194 = vector.broadcast %cst_76 : f32 to vector<8x128xf32>
    %195 = arith.addf %193, %194 : vector<8x128xf32>
    %cst_77 = arith.constant 5.000000e-01 : f32
    %196 = vector.broadcast %cst_77 : f32 to vector<8x128xf32>
    %197 = arith.mulf %196, %195 : vector<8x128xf32>
    %198 = math.tanh %190 : vector<8x128xf32>
    %199 = vector.extract_strided_slice %197 {offsets = [0, 0], sizes = [8, 32], strides = [1, 1]} : vector<8x128xf32> to vector<8x32xf32>
    %200 = vector.extract_strided_slice %197 {offsets = [0, 32], sizes = [8, 32], strides = [1, 1]} : vector<8x128xf32> to vector<8x32xf32>
    %201 = vector.extract_strided_slice %198 {offsets = [0, 64], sizes = [8, 32], strides = [1, 1]} : vector<8x128xf32> to vector<8x32xf32>
    %202 = vector.extract_strided_slice %197 {offsets = [0, 96], sizes = [8, 32], strides = [1, 1]} : vector<8x128xf32> to vector<8x32xf32>
    %203 = arith.mulf %200, %187 : vector<8x32xf32>
    %204 = arith.mulf %199, %201 : vector<8x32xf32>
    %205 = arith.addf %203, %204 : vector<8x32xf32>
    %206 = math.tanh %205 : vector<8x32xf32>
    %207 = arith.mulf %202, %206 : vector<8x32xf32>
    %c8_78 = arith.constant 8 : index
    %c0_79 = arith.constant 0 : index
    %208 = vector.load %arg8[%c8_78, %c0_79] : memref<64x128xf32, #tpu.memory_space<vmem>>, vector<8x128xf32>
    %cst_80 = arith.constant dense<0.000000e+00> : vector<8x128xf32>
    %209 = tpu.matmul %207, %178, %cst_80 {dimension_numbers = #tpu.dot_dimension_numbers<[1], [0], [0], [1], [0, 0, 1, 1], [], []>} : vector<8x32xf32>, vector<32x128xf32>, vector<8x128xf32> -> vector<8x128xf32>
    %210 = arith.addf %208, %209 : vector<8x128xf32>
    %cst_81 = arith.constant 5.000000e-01 : f32
    %211 = vector.broadcast %cst_81 : f32 to vector<8x128xf32>
    %212 = arith.mulf %211, %210 : vector<8x128xf32>
    %213 = math.tanh %212 : vector<8x128xf32>
    %cst_82 = arith.constant 1.000000e+00 : f32
    %214 = vector.broadcast %cst_82 : f32 to vector<8x128xf32>
    %215 = arith.addf %213, %214 : vector<8x128xf32>
    %cst_83 = arith.constant 5.000000e-01 : f32
    %216 = vector.broadcast %cst_83 : f32 to vector<8x128xf32>
    %217 = arith.mulf %216, %215 : vector<8x128xf32>
    %218 = math.tanh %210 : vector<8x128xf32>
    %219 = vector.extract_strided_slice %217 {offsets = [0, 0], sizes = [8, 32], strides = [1, 1]} : vector<8x128xf32> to vector<8x32xf32>
    %220 = vector.extract_strided_slice %217 {offsets = [0, 32], sizes = [8, 32], strides = [1, 1]} : vector<8x128xf32> to vector<8x32xf32>
    %221 = vector.extract_strided_slice %218 {offsets = [0, 64], sizes = [8, 32], strides = [1, 1]} : vector<8x128xf32> to vector<8x32xf32>
    %222 = vector.extract_strided_slice %217 {offsets = [0, 96], sizes = [8, 32], strides = [1, 1]} : vector<8x128xf32> to vector<8x32xf32>
    %223 = arith.mulf %220, %205 : vector<8x32xf32>
    %224 = arith.mulf %219, %221 : vector<8x32xf32>
    %225 = arith.addf %223, %224 : vector<8x32xf32>
    %226 = math.tanh %225 : vector<8x32xf32>
    %227 = arith.mulf %222, %226 : vector<8x32xf32>
    %c16_84 = arith.constant 16 : index
    %c0_85 = arith.constant 0 : index
    %228 = vector.load %arg8[%c16_84, %c0_85] : memref<64x128xf32, #tpu.memory_space<vmem>>, vector<8x128xf32>
    %cst_86 = arith.constant dense<0.000000e+00> : vector<8x128xf32>
    %229 = tpu.matmul %227, %178, %cst_86 {dimension_numbers = #tpu.dot_dimension_numbers<[1], [0], [0], [1], [0, 0, 1, 1], [], []>} : vector<8x32xf32>, vector<32x128xf32>, vector<8x128xf32> -> vector<8x128xf32>
    %230 = arith.addf %228, %229 : vector<8x128xf32>
    %cst_87 = arith.constant 5.000000e-01 : f32
    %231 = vector.broadcast %cst_87 : f32 to vector<8x128xf32>
    %232 = arith.mulf %231, %230 : vector<8x128xf32>
    %233 = math.tanh %232 : vector<8x128xf32>
    %cst_88 = arith.constant 1.000000e+00 : f32
    %234 = vector.broadcast %cst_88 : f32 to vector<8x128xf32>
    %235 = arith.addf %233, %234 : vector<8x128xf32>
    %cst_89 = arith.constant 5.000000e-01 : f32
    %236 = vector.broadcast %cst_89 : f32 to vector<8x128xf32>
    %237 = arith.mulf %236, %235 : vector<8x128xf32>
    %238 = math.tanh %230 : vector<8x128xf32>
    %239 = vector.extract_strided_slice %237 {offsets = [0, 0], sizes = [8, 32], strides = [1, 1]} : vector<8x128xf32> to vector<8x32xf32>
    %240 = vector.extract_strided_slice %237 {offsets = [0, 32], sizes = [8, 32], strides = [1, 1]} : vector<8x128xf32> to vector<8x32xf32>
    %241 = vector.extract_strided_slice %238 {offsets = [0, 64], sizes = [8, 32], strides = [1, 1]} : vector<8x128xf32> to vector<8x32xf32>
    %242 = vector.extract_strided_slice %237 {offsets = [0, 96], sizes = [8, 32], strides = [1, 1]} : vector<8x128xf32> to vector<8x32xf32>
    %243 = arith.mulf %240, %225 : vector<8x32xf32>
    %244 = arith.mulf %239, %241 : vector<8x32xf32>
    %245 = arith.addf %243, %244 : vector<8x32xf32>
    %246 = math.tanh %245 : vector<8x32xf32>
    %247 = arith.mulf %242, %246 : vector<8x32xf32>
    %c24_90 = arith.constant 24 : index
    %c0_91 = arith.constant 0 : index
    %248 = vector.load %arg8[%c24_90, %c0_91] : memref<64x128xf32, #tpu.memory_space<vmem>>, vector<8x128xf32>
    %cst_92 = arith.constant dense<0.000000e+00> : vector<8x128xf32>
    %249 = tpu.matmul %247, %178, %cst_92 {dimension_numbers = #tpu.dot_dimension_numbers<[1], [0], [0], [1], [0, 0, 1, 1], [], []>} : vector<8x32xf32>, vector<32x128xf32>, vector<8x128xf32> -> vector<8x128xf32>
    %250 = arith.addf %248, %249 : vector<8x128xf32>
    %cst_93 = arith.constant 5.000000e-01 : f32
    %251 = vector.broadcast %cst_93 : f32 to vector<8x128xf32>
    %252 = arith.mulf %251, %250 : vector<8x128xf32>
    %253 = math.tanh %252 : vector<8x128xf32>
    %cst_94 = arith.constant 1.000000e+00 : f32
    %254 = vector.broadcast %cst_94 : f32 to vector<8x128xf32>
    %255 = arith.addf %253, %254 : vector<8x128xf32>
    %cst_95 = arith.constant 5.000000e-01 : f32
    %256 = vector.broadcast %cst_95 : f32 to vector<8x128xf32>
    %257 = arith.mulf %256, %255 : vector<8x128xf32>
    %258 = math.tanh %250 : vector<8x128xf32>
    %259 = vector.extract_strided_slice %257 {offsets = [0, 0], sizes = [8, 32], strides = [1, 1]} : vector<8x128xf32> to vector<8x32xf32>
    %260 = vector.extract_strided_slice %257 {offsets = [0, 32], sizes = [8, 32], strides = [1, 1]} : vector<8x128xf32> to vector<8x32xf32>
    %261 = vector.extract_strided_slice %258 {offsets = [0, 64], sizes = [8, 32], strides = [1, 1]} : vector<8x128xf32> to vector<8x32xf32>
    %262 = vector.extract_strided_slice %257 {offsets = [0, 96], sizes = [8, 32], strides = [1, 1]} : vector<8x128xf32> to vector<8x32xf32>
    %263 = arith.mulf %260, %245 : vector<8x32xf32>
    %264 = arith.mulf %259, %261 : vector<8x32xf32>
    %265 = arith.addf %263, %264 : vector<8x32xf32>
    %266 = math.tanh %265 : vector<8x32xf32>
    %267 = arith.mulf %262, %266 : vector<8x32xf32>
    %c32_96 = arith.constant 32 : index
    %c0_97 = arith.constant 0 : index
    %268 = vector.load %arg8[%c32_96, %c0_97] : memref<64x128xf32, #tpu.memory_space<vmem>>, vector<8x128xf32>
    %cst_98 = arith.constant dense<0.000000e+00> : vector<8x128xf32>
    %269 = tpu.matmul %267, %178, %cst_98 {dimension_numbers = #tpu.dot_dimension_numbers<[1], [0], [0], [1], [0, 0, 1, 1], [], []>} : vector<8x32xf32>, vector<32x128xf32>, vector<8x128xf32> -> vector<8x128xf32>
    %270 = arith.addf %268, %269 : vector<8x128xf32>
    %cst_99 = arith.constant 5.000000e-01 : f32
    %271 = vector.broadcast %cst_99 : f32 to vector<8x128xf32>
    %272 = arith.mulf %271, %270 : vector<8x128xf32>
    %273 = math.tanh %272 : vector<8x128xf32>
    %cst_100 = arith.constant 1.000000e+00 : f32
    %274 = vector.broadcast %cst_100 : f32 to vector<8x128xf32>
    %275 = arith.addf %273, %274 : vector<8x128xf32>
    %cst_101 = arith.constant 5.000000e-01 : f32
    %276 = vector.broadcast %cst_101 : f32 to vector<8x128xf32>
    %277 = arith.mulf %276, %275 : vector<8x128xf32>
    %278 = math.tanh %270 : vector<8x128xf32>
    %279 = vector.extract_strided_slice %277 {offsets = [0, 0], sizes = [8, 32], strides = [1, 1]} : vector<8x128xf32> to vector<8x32xf32>
    %280 = vector.extract_strided_slice %277 {offsets = [0, 32], sizes = [8, 32], strides = [1, 1]} : vector<8x128xf32> to vector<8x32xf32>
    %281 = vector.extract_strided_slice %278 {offsets = [0, 64], sizes = [8, 32], strides = [1, 1]} : vector<8x128xf32> to vector<8x32xf32>
    %282 = vector.extract_strided_slice %277 {offsets = [0, 96], sizes = [8, 32], strides = [1, 1]} : vector<8x128xf32> to vector<8x32xf32>
    %283 = arith.mulf %280, %265 : vector<8x32xf32>
    %284 = arith.mulf %279, %281 : vector<8x32xf32>
    %285 = arith.addf %283, %284 : vector<8x32xf32>
    %286 = math.tanh %285 : vector<8x32xf32>
    %287 = arith.mulf %282, %286 : vector<8x32xf32>
    %c40_102 = arith.constant 40 : index
    %c0_103 = arith.constant 0 : index
    %288 = vector.load %arg8[%c40_102, %c0_103] : memref<64x128xf32, #tpu.memory_space<vmem>>, vector<8x128xf32>
    %cst_104 = arith.constant dense<0.000000e+00> : vector<8x128xf32>
    %289 = tpu.matmul %287, %178, %cst_104 {dimension_numbers = #tpu.dot_dimension_numbers<[1], [0], [0], [1], [0, 0, 1, 1], [], []>} : vector<8x32xf32>, vector<32x128xf32>, vector<8x128xf32> -> vector<8x128xf32>
    %290 = arith.addf %288, %289 : vector<8x128xf32>
    %cst_105 = arith.constant 5.000000e-01 : f32
    %291 = vector.broadcast %cst_105 : f32 to vector<8x128xf32>
    %292 = arith.mulf %291, %290 : vector<8x128xf32>
    %293 = math.tanh %292 : vector<8x128xf32>
    %cst_106 = arith.constant 1.000000e+00 : f32
    %294 = vector.broadcast %cst_106 : f32 to vector<8x128xf32>
    %295 = arith.addf %293, %294 : vector<8x128xf32>
    %cst_107 = arith.constant 5.000000e-01 : f32
    %296 = vector.broadcast %cst_107 : f32 to vector<8x128xf32>
    %297 = arith.mulf %296, %295 : vector<8x128xf32>
    %298 = math.tanh %290 : vector<8x128xf32>
    %299 = vector.extract_strided_slice %297 {offsets = [0, 0], sizes = [8, 32], strides = [1, 1]} : vector<8x128xf32> to vector<8x32xf32>
    %300 = vector.extract_strided_slice %297 {offsets = [0, 32], sizes = [8, 32], strides = [1, 1]} : vector<8x128xf32> to vector<8x32xf32>
    %301 = vector.extract_strided_slice %298 {offsets = [0, 64], sizes = [8, 32], strides = [1, 1]} : vector<8x128xf32> to vector<8x32xf32>
    %302 = vector.extract_strided_slice %297 {offsets = [0, 96], sizes = [8, 32], strides = [1, 1]} : vector<8x128xf32> to vector<8x32xf32>
    %303 = arith.mulf %300, %285 : vector<8x32xf32>
    %304 = arith.mulf %299, %301 : vector<8x32xf32>
    %305 = arith.addf %303, %304 : vector<8x32xf32>
    %306 = math.tanh %305 : vector<8x32xf32>
    %307 = arith.mulf %302, %306 : vector<8x32xf32>
    %c48_108 = arith.constant 48 : index
    %c0_109 = arith.constant 0 : index
    %308 = vector.load %arg8[%c48_108, %c0_109] : memref<64x128xf32, #tpu.memory_space<vmem>>, vector<8x128xf32>
    %cst_110 = arith.constant dense<0.000000e+00> : vector<8x128xf32>
    %309 = tpu.matmul %307, %178, %cst_110 {dimension_numbers = #tpu.dot_dimension_numbers<[1], [0], [0], [1], [0, 0, 1, 1], [], []>} : vector<8x32xf32>, vector<32x128xf32>, vector<8x128xf32> -> vector<8x128xf32>
    %310 = arith.addf %308, %309 : vector<8x128xf32>
    %cst_111 = arith.constant 5.000000e-01 : f32
    %311 = vector.broadcast %cst_111 : f32 to vector<8x128xf32>
    %312 = arith.mulf %311, %310 : vector<8x128xf32>
    %313 = math.tanh %312 : vector<8x128xf32>
    %cst_112 = arith.constant 1.000000e+00 : f32
    %314 = vector.broadcast %cst_112 : f32 to vector<8x128xf32>
    %315 = arith.addf %313, %314 : vector<8x128xf32>
    %cst_113 = arith.constant 5.000000e-01 : f32
    %316 = vector.broadcast %cst_113 : f32 to vector<8x128xf32>
    %317 = arith.mulf %316, %315 : vector<8x128xf32>
    %318 = math.tanh %310 : vector<8x128xf32>
    %319 = vector.extract_strided_slice %317 {offsets = [0, 0], sizes = [8, 32], strides = [1, 1]} : vector<8x128xf32> to vector<8x32xf32>
    %320 = vector.extract_strided_slice %317 {offsets = [0, 32], sizes = [8, 32], strides = [1, 1]} : vector<8x128xf32> to vector<8x32xf32>
    %321 = vector.extract_strided_slice %318 {offsets = [0, 64], sizes = [8, 32], strides = [1, 1]} : vector<8x128xf32> to vector<8x32xf32>
    %322 = vector.extract_strided_slice %317 {offsets = [0, 96], sizes = [8, 32], strides = [1, 1]} : vector<8x128xf32> to vector<8x32xf32>
    %323 = arith.mulf %320, %305 : vector<8x32xf32>
    %324 = arith.mulf %319, %321 : vector<8x32xf32>
    %325 = arith.addf %323, %324 : vector<8x32xf32>
    %326 = math.tanh %325 : vector<8x32xf32>
    %327 = arith.mulf %322, %326 : vector<8x32xf32>
    %c56_114 = arith.constant 56 : index
    %c0_115 = arith.constant 0 : index
    %328 = vector.load %arg8[%c56_114, %c0_115] : memref<64x128xf32, #tpu.memory_space<vmem>>, vector<8x128xf32>
    %cst_116 = arith.constant dense<0.000000e+00> : vector<8x128xf32>
    %329 = tpu.matmul %327, %178, %cst_116 {dimension_numbers = #tpu.dot_dimension_numbers<[1], [0], [0], [1], [0, 0, 1, 1], [], []>} : vector<8x32xf32>, vector<32x128xf32>, vector<8x128xf32> -> vector<8x128xf32>
    %330 = arith.addf %328, %329 : vector<8x128xf32>
    %cst_117 = arith.constant 5.000000e-01 : f32
    %331 = vector.broadcast %cst_117 : f32 to vector<8x128xf32>
    %332 = arith.mulf %331, %330 : vector<8x128xf32>
    %333 = math.tanh %332 : vector<8x128xf32>
    %cst_118 = arith.constant 1.000000e+00 : f32
    %334 = vector.broadcast %cst_118 : f32 to vector<8x128xf32>
    %335 = arith.addf %333, %334 : vector<8x128xf32>
    %cst_119 = arith.constant 5.000000e-01 : f32
    %336 = vector.broadcast %cst_119 : f32 to vector<8x128xf32>
    %337 = arith.mulf %336, %335 : vector<8x128xf32>
    %338 = math.tanh %330 : vector<8x128xf32>
    %339 = vector.extract_strided_slice %337 {offsets = [0, 0], sizes = [8, 32], strides = [1, 1]} : vector<8x128xf32> to vector<8x32xf32>
    %340 = vector.extract_strided_slice %337 {offsets = [0, 32], sizes = [8, 32], strides = [1, 1]} : vector<8x128xf32> to vector<8x32xf32>
    %341 = vector.extract_strided_slice %338 {offsets = [0, 64], sizes = [8, 32], strides = [1, 1]} : vector<8x128xf32> to vector<8x32xf32>
    %342 = vector.extract_strided_slice %337 {offsets = [0, 96], sizes = [8, 32], strides = [1, 1]} : vector<8x128xf32> to vector<8x32xf32>
    %343 = arith.mulf %340, %325 : vector<8x32xf32>
    %344 = arith.mulf %339, %341 : vector<8x32xf32>
    %345 = arith.addf %343, %344 : vector<8x32xf32>
    %346 = math.tanh %345 : vector<8x32xf32>
    %347 = arith.mulf %342, %346 : vector<8x32xf32>
    %c0_120 = arith.constant 0 : index
    %c0_121 = arith.constant 0 : index
    %348 = vector.load %arg4[%c0_120, %c0_121] : memref<32x3xf32, #tpu.memory_space<vmem>>, vector<32x3xf32>
    %cst_122 = arith.constant dense<0.000000e+00> : vector<8x3xf32>
    %349 = tpu.matmul %347, %348, %cst_122 {dimension_numbers = #tpu.dot_dimension_numbers<[1], [0], [0], [1], [0, 0, 1, 1], [], []>} : vector<8x32xf32>, vector<32x3xf32>, vector<8x3xf32> -> vector<8x3xf32>
    %c0_123 = arith.constant 0 : index
    %c0_124 = arith.constant 0 : index
    %350 = vector.load %arg5[%c0_123, %c0_124] : memref<1x3xf32, #tpu.memory_space<vmem>>, vector<1x3xf32>
    %351 = vector.broadcast %350 : vector<1x3xf32> to vector<8x3xf32>
    %352 = arith.addf %349, %351 : vector<8x3xf32>
    %c0_125 = arith.constant 0 : index
    %c0_126 = arith.constant 0 : index
    %353 = vector.load %arg6[%c0_125, %c0_126] : memref<8x3xf32, #tpu.memory_space<vmem>>, vector<8x3xf32>
    tpu.vector_store %arg6[%c0_125, %c0_126], %352 {strides = array<i32>} : memref<8x3xf32, #tpu.memory_space<vmem>>, vector<8x3xf32>,
    return
  }
}

</mosaic_0001>

<bundles_post_ra>
// kernel: tpu_custom_call.1
= control target key start
LH: loop header
LB: loop body
LE: loop exit
PB: predicated region body
PF: predicated region fallthrough
CT: control target
= control target key end

     0   :  { %v2633_v2 = vmov 0.0|0.0   ;;  %vm46_vm0 = vcmask 261120   ;;  %vm2634_vm1 = vmmov 0   ;;  %v2635_v4 = vmov 0.0   ;;  %s2636_s19 = smov 64   ;;  %s2637_s20 = smov 32   ;;  %s3039_s1 = inlined_call_operand.vmem [shape: f32[2,32,128], index: 1, kind: input, shape index: {}]   ;;  %s3040_s2 = inlined_call_operand.vmem [shape: f32[2,32,128], index: 2, kind: input, shape index: {}]   ;;  %s3041_s0 = inlined_call_operand.vmem [shape: f32[64,32], index: 0, kind: input, shape index: {}]   ;;  %s3042_s3 = inlined_call_operand.vmem [shape: f32[2,1,128], index: 3, kind: input, shape index: {}]   ;;  %s3043_s4 = inlined_call_operand.vmem [shape: f32[32,3], index: 4, kind: input, shape index: {}]   ;;  %s3044_s5 = inlined_call_operand.vmem [shape: f32[1,3], index: 5, kind: input, shape index: {}]   ;;  %s3045_s6 = inlined_call_operand.vmem [shape: f32[8,3], index: 6, kind: output, shape index: {}]  }
   0x1   :  { %v23_v0 = vld [vmem:[%s3039_s1] sm:$0xff]  ;;  %v24_v1 = vld [vmem:[%s3039_s1 + $0x8] sm:$0xff]  ;;  %2422 = vmatprep.subr.bf16.mxu1 %v2633_v2  ;;  %2215 = vmatprep.mubr.msk.f32.mxu1 %vm2634_vm1, %v2635_v4  ;;  %v25_v7 = vld [vmem:[%s3039_s1 + $0x10] sm:$0xff]  ;;  %vm2029_vm2 = vcmask 23552  }
   0x2   :  { %v27_v3 = vld [vmem:[%s3040_s2] sm:$0xff]  ;;  %v2414_v5 = vpack.c.bf16 %v24_v1, %v23_v0  ;;  %v28_v6 = vld [vmem:[%s3040_s2 + $0x8] sm:$0xff]  ;;  %v26_v8 = vld [vmem:[%s3039_s1 + $0x18] sm:$0xff] }
   0x3   :  { %v2694_v9 = vpack.c.bf16 %v28_v6, %v27_v3  ;;  %v2418_v10 = vpack.c.bf16 %v26_v8, %v25_v7  ;;  %v32_v11 = vld [vmem:[%s3041_s0] sm:$0xff]  ;;  %v29_v12 = vld [vmem:[%s3040_s2 + $0x10] sm:$0xff]  ;;  %v30_v13 = vld [vmem:[%s3040_s2 + $0x18] sm:$0xff] }
   0x4   :  { %2415 = vmatprep.subr.bf16.mxu0 %v2414_v5  ;;  %2195 = vmatprep.mubr.msk.f32.mxu0 %vm46_vm0, %v32_v11  ;;  %v2707_v14 = vpack.c.bf16 %v30_v13, %v29_v12  ;;  %v33_v15 = vld [vmem:[%s3041_s0 + $0x8] sm:$0xff]  ;;  %v2731_v16 = vld [vmem:[%s3042_s3] ss:$0 sm:$0xff]  ;;  %v34_v51 = vld [vmem:[%s3041_s0 + $0x10] sm:$0xff] }
   0x5   :  { %2417 = vmatpush3.bf16.msra.mxu0 %v2414_v5  ;;  %2424 = vmatpush3.bf16.msra.mxu1 %v2694_v9  ;;  %v35_v52 = vld [vmem:[%s3041_s0 + $0x18] sm:$0xff]  ;;  %v36_v53 = vld [vmem:[%s3041_s0 + $0x20] sm:$0xff]  ;;  %v37_v54 = vld [vmem:[%s3041_s0 + $0x28] sm:$0xff] }
   0x6   :  { %2419 = vmatprep.subr.bf16.mxu0 %v2418_v10  ;;  %2425 = vmatprep.subr.bf16.mxu1 %v2633_v2  ;;  %v38_v55 = vld [vmem:[%s3041_s0 + $0x30] sm:$0xff]  ;;  %v39_v56 = vld [vmem:[%s3041_s0 + $0x38] sm:$0xff] }
   0x9   :  { %2421 = vmatpush3.bf16.msra.mxu0 %v2418_v10  ;;  %2427 = vmatpush3.bf16.msra.mxu1 %v2707_v14 }
   0xa   :  { %2428 = vmatprep.subr.bf16.mxu1 %v2633_v2  ;;  %2434 = vmatprep.subr.bf16.mxu0 %v2633_v2 }
   0xc   :  { %2196 = vmatmul.mubr.msk.f32.vlgmr.msra.gmra.mrb[0].mxu0 %vm46_vm0, %v33_v15  ;;  %2216 = vmatmul.mubr.f32.vlgmr.msra.gmra.mrb[0].mxu1 %v2635_v4 }
   0xd   :  { %2430 = vmatpush3.bf16.msra.mxu1 %v2694_v9  ;;  %2226 = vmatprep.mubr.msk.f32.mxu1 %vm2634_vm1, %v2635_v4 }
   0xe   :  { %2431 = vmatprep.subr.bf16.mxu1 %v2633_v2  ;;  %2436 = vmatpush3.bf16.msra.mxu0 %v2694_v9 }
   0xf   :  { %2437 = vmatprep.subr.bf16.mxu0 %v2633_v2  ;;  %2198 = vmatprep.mubr.msk.f32.mxu0 %vm46_vm0, %v34_v51 }
  0x10   :  { %2199 = vmatmul.mubr.msk.f32.gmra.mrb[2].mxu0 %vm46_vm0, %v35_v52 }
  0x11   :  { %2433 = vmatpush3.bf16.msra.mxu1 %v2707_v14  ;;  %2201 = vmatprep.mubr.msk.f32.mxu0 %vm46_vm0, %v36_v53 }
  0x12   :  { %2439 = vmatpush3.bf16.msra.mxu0 %v2707_v14  ;;  %2440 = vmatprep.subr.bf16.mxu1 %v2633_v2 }
  0x13   :  { %2446 = vmatprep.subr.bf16.mxu0 %v2633_v2 }
  0x14   :  { %2202 = vmatmul.mubr.msk.f32.gmra.mrb[4].mxu0 %vm46_vm0, %v37_v54 }
  0x15   :  { %2204 = vmatprep.mubr.msk.f32.mxu0 %vm46_vm0, %v38_v55 }
  0x18   :  { %2205 = vmatmul.mubr.msk.f32.gmra.mrb[6].mxu0 %vm46_vm0, %v39_v56 }
  0x19   :  { %2237 = vmatprep.mubr.msk.f32.mxu0 %vm2634_vm1, %v2635_v4 }
  0xdf   :  { %v2197_v17 = vpop.f32.mrb[0].mxu0  ;;  %v254_v18 = vpop.f32.mrb[0].mxu1 }
  0xe0   :  { %v137_v19 = vpop.f32.mrb[1].mxu0  ;;  %v2217_v20 = vpop.f32.mrb[1].mxu1  ;;  %v143_v37 = vadd.f32 %v2197_v17, %v2731_v16 }
  0xe1   :  { %v138_v21 = vadd.f32 %v2731_v16, %v137_v19 }
  0xe3   :  { %v258_v22 = vadd.f32 %v254_v18, %v138_v21  ;;  %v2200_v60 = vpop.f32.mrb[2].mxu0 }
  0xe4   :  { %v147_v61 = vpop.f32.mrb[3].mxu0 }
  0xe5   :  { %2537 = vtanh.f32 %v258_v22  ;;  %v259_v24 = vmul.f32 0.5, %v258_v22  ;;  %v148_v5 = vadd.f32 %v2731_v16, %v147_v61 }
  0xe7   :  { %2539 = vtanh.f32 %v259_v24  ;;  %v2777_v62 = vpop.f32.mrb[4].mxu0 }
  0xe8   :  { %v2779_v63 = vpop.f32.mrb[5].mxu0 }
  0xeb   :  { %v2781_v0 = vpop.f32.mrb[6].mxu0 }
  0xec   :  { %v2783_v1 = vpop.f32.mrb[7].mxu0 }
  0xef   :  { %v2538_v23 = vpop.eup %2537 }
  0xf0   :  { %266 = vrot.lane.b32.xlu0 %v2538_v23, %s2636_s19 }
  0xf1   :  { %v2540_v25 = vpop.eup %2539 }
  0xf2   :  { %v261_v26 = vadd.f32 1.0, %v2540_v25 }
  0xf4   :  { %v262_v27 = vmul.f32 0.5, %v261_v26  ;;  %v153_v26 = vadd.f32 %v2200_v60, %v2731_v16 }
  0xf6   :  { %v264_v30 = vmul.f32 0.0, %v262_v27 }
 0x162   :  { %v267_v28 = vpop.permute.xlu0 %266 }
 0x163   :  { %v269_v29 = vmul.f32 %v267_v28, %v262_v27 }
 0x165   :  { %271 = vrot.lane.b32.xlu0 %v269_v29, %s2637_s20 }
 0x1d7   :  { %v272_v31 = vpop.permute.xlu0 %271 }
 0x1d8   :  { %v274_v32 = vadd.f32 %v272_v31, %v264_v30 }
 0x1da   :  { %2541 = vtanh.f32 %v274_v32 }
 0x1e4   :  { %v2542_v33 = vpop.eup %2541 }
 0x1e5   :  { %277 = vrot.lane.b32.xlu1 %v2542_v33, %s2636_s19 }
 0x257   :  { %v278_v34 = vpop.permute.xlu1 %277 }
 0x258   :  { %v280_v35 = vmul.f32 %v278_v34, %v262_v27 }
 0x25a   :  { %283 = vrot.lane.b32.xlu1 %v280_v35, %s2637_s20 }
 0x2cc   :  { %v284_v36 = vpop.permute.xlu1 %283 }
 0x2cd   :  { %985 = vst.msk [vmem:[#allocation2] sm:$0xff] %vm46_vm0, %v284_v36  ;;  %2227 = vmatmul.mubr.msk.f32.vlgmr.msra.gmra.mrb[2].mxu1 %vm46_vm0, %v284_v36 }
 0x2ce   :  { %2442 = vmatpush3.bf16.msra.mxu1 %v2694_v9  ;;  %2248 = vmatprep.mubr.msk.f32.mxu1 %vm2634_vm1, %v2635_v4 }
 0x2cf   :  { %2443 = vmatprep.subr.bf16.mxu1 %v2633_v2 }
 0x2d2   :  { %2445 = vmatpush3.bf16.msra.mxu1 %v2707_v14 }
 0x2d3   :  { %2452 = vmatprep.subr.bf16.mxu1 %v2633_v2 }
 0x3a0   :  { %v353_v38 = vpop.f32.mrb[2].mxu1 }
 0x3a1   :  { %v357_v39 = vadd.f32 %v353_v38, %v143_v37  ;;  %v2228_v40 = vpop.f32.mrb[3].mxu1 }
 0x3a3   :  { %2543 = vtanh.f32 %v357_v39  ;;  %v358_v42 = vmul.f32 0.5, %v357_v39 }
 0x3a5   :  { %2545 = vtanh.f32 %v358_v42 }
 0x3ad   :  { %v2544_v41 = vpop.eup %2543 }
 0x3ae   :  { %365 = vrot.lane.b32.xlu0 %v2544_v41, %s2636_s19 }
 0x3af   :  { %v2546_v43 = vpop.eup %2545 }
 0x3b0   :  { %v360_v44 = vadd.f32 1.0, %v2546_v43 }
 0x3b2   :  { %v361_v45 = vmul.f32 0.5, %v360_v44  ;;  %v158_v44 = vadd.f32 %v2731_v16, %v2779_v63  ;;  %v163_v63 = vadd.f32 %v2777_v62, %v2731_v16  ;;  %v2051_v62 = vld [vmem:[%s3039_s1 + $0x20] sm:$0xff] }
 0x3b4   :  { %v363_v48 = vmul.f32 %v361_v45, %v274_v32 }
 0x420   :  { %v366_v46 = vpop.permute.xlu0 %365 }
 0x421   :  { %v368_v47 = vmul.f32 %v366_v46, %v361_v45 }
 0x423   :  { %370 = vrot.lane.b32.xlu1 %v368_v47, %s2637_s20 }
 0x495   :  { %v371_v49 = vpop.permute.xlu1 %370 }
 0x496   :  { %v373_v50 = vadd.f32 %v371_v49, %v363_v48 }
 0x498   :  { %2547 = vtanh.f32 %v373_v50 }
 0x4a2   :  { %v2548_v57 = vpop.eup %2547 }
 0x4a3   :  { %376 = vrot.lane.b32.xlu0 %v2548_v57, %s2636_s19 }
 0x515   :  { %v377_v58 = vpop.permute.xlu0 %376 }
 0x516   :  { %v379_v59 = vmul.f32 %v377_v58, %v361_v45 }
 0x518   :  { %382 = vrot.lane.b32.xlu1 %v379_v59, %s2637_s20 }
 0x58a   :  { %v383_v3 = vpop.permute.xlu1 %382 }
 0x58b   :  { %986 = vst.msk [vmem:[#allocation2 + $0x8] sm:$0xff] %vm46_vm0, %v383_v3  ;;  %2238 = vmatmul.mubr.msk.f32.vlgmr.msra.gmra.mrb[8].mxu0 %vm46_vm0, %v383_v3 }
 0x58c   :  { %2448 = vmatpush3.bf16.msra.mxu0 %v2694_v9  ;;  %2259 = vmatprep.mubr.msk.f32.mxu0 %vm2634_vm1, %v2635_v4 }
 0x58d   :  { %2449 = vmatprep.subr.bf16.mxu0 %v2633_v2 }
 0x590   :  { %2451 = vmatpush3.bf16.msra.mxu0 %v2707_v14 }
 0x591   :  { %2458 = vmatprep.subr.bf16.mxu0 %v2633_v2 }
 0x65e   :  { %v452_v6 = vpop.f32.mrb[8].mxu0 }
 0x65f   :  { %v456_v7 = vadd.f32 %v452_v6, %v148_v5  ;;  %v2239_v8 = vpop.f32.mrb[9].mxu0 }
 0x661   :  { %2549 = vtanh.f32 %v456_v7  ;;  %v457_v11 = vmul.f32 0.5, %v456_v7 }
 0x663   :  { %2551 = vtanh.f32 %v457_v11 }
 0x66b   :  { %v2550_v10 = vpop.eup %2549 }
 0x66c   :  { %464 = vrot.lane.b32.xlu0 %v2550_v10, %s2636_s19 }
 0x66d   :  { %v2552_v12 = vpop.eup %2551 }
 0x66e   :  { %v459_v13 = vadd.f32 1.0, %v2552_v12 }
 0x670   :  { %v460_v15 = vmul.f32 0.5, %v459_v13 }
 0x672   :  { %v462_v19 = vmul.f32 %v460_v15, %v373_v50 }
 0x6de   :  { %v465_v17 = vpop.permute.xlu0 %464 }
 0x6df   :  { %v467_v18 = vmul.f32 %v465_v17, %v460_v15 }
 0x6e1   :  { %469 = vrot.lane.b32.xlu1 %v467_v18, %s2637_s20  ;;  %v2052_v18 = vld [vmem:[%s3039_s1 + $0x28] sm:$0xff] }
 0x753   :  { %v470_v20 = vpop.permute.xlu1 %469 }
 0x754   :  { %v472_v21 = vadd.f32 %v470_v20, %v462_v19  ;;  %v2470_v19 = vpack.c.bf16 %v2052_v18, %v2051_v62 }
 0x756   :  { %2553 = vtanh.f32 %v472_v21 }
 0x760   :  { %v2554_v22 = vpop.eup %2553 }
 0x761   :  { %475 = vrot.lane.b32.xlu0 %v2554_v22, %s2636_s19 }
 0x7d3   :  { %v476_v23 = vpop.permute.xlu0 %475 }
 0x7d4   :  { %v478_v24 = vmul.f32 %v476_v23, %v460_v15  ;;  %v2053_v23 = vld [vmem:[%s3039_s1 + $0x30] sm:$0xff] }
 0x7d6   :  { %481 = vrot.lane.b32.xlu1 %v478_v24, %s2637_s20  ;;  %v2054_v24 = vld [vmem:[%s3039_s1 + $0x38] sm:$0xff] }
 0x848   :  { %v482_v25 = vpop.permute.xlu1 %481 }
 0x849   :  { %987 = vst.msk [vmem:[#allocation2 + $0x10] sm:$0xff] %vm46_vm0, %v482_v25  ;;  %2249 = vmatmul.mubr.msk.f32.vlgmr.msra.gmra.mrb[4].mxu1 %vm46_vm0, %v482_v25  ;;  %v2474_v25 = vpack.c.bf16 %v2054_v24, %v2053_v23 }
 0x84a   :  { %2454 = vmatpush3.bf16.msra.mxu1 %v2694_v9  ;;  %2270 = vmatprep.mubr.msk.f32.mxu1 %vm2634_vm1, %v2635_v4 }
 0x84b   :  { %2455 = vmatprep.subr.bf16.mxu1 %v2633_v2 }
 0x84e   :  { %2457 = vmatpush3.bf16.msra.mxu1 %v2707_v14 }
 0x84f   :  { %2464 = vmatprep.subr.bf16.mxu1 %v2633_v2 }
 0x91c   :  { %v551_v27 = vpop.f32.mrb[4].mxu1 }
 0x91d   :  { %v555_v28 = vadd.f32 %v551_v27, %v153_v26  ;;  %v2250_v29 = vpop.f32.mrb[5].mxu1  ;;  %v1005_v27 = vld [vmem:[#allocation2] sm:$0xff] }
 0x91e   :  { %v1007_v29 = vld [vmem:[#allocation2 + $0x10] sm:$0xff] }
 0x91f   :  { %2555 = vtanh.f32 %v555_v28  ;;  %v556_v31 = vmul.f32 0.5, %v555_v28  ;;  %v1006_v28 = vld [vmem:[#allocation2 + $0x8] sm:$0xff] }
 0x921   :  { %2557 = vtanh.f32 %v556_v31 }
 0x929   :  { %v2556_v30 = vpop.eup %2555 }
 0x92a   :  { %563 = vrot.lane.b32.xlu0 %v2556_v30, %s2636_s19 }
 0x92b   :  { %v2558_v32 = vpop.eup %2557 }
 0x92c   :  { %v558_v33 = vadd.f32 1.0, %v2558_v32 }
 0x92e   :  { %v559_v34 = vmul.f32 0.5, %v558_v33  ;;  %v168_v33 = vadd.f32 %v2731_v16, %v2783_v1 }
 0x930   :  { %v561_v37 = vmul.f32 %v559_v34, %v472_v21 }
 0x99c   :  { %v564_v35 = vpop.permute.xlu0 %563 }
 0x99d   :  { %v566_v36 = vmul.f32 %v564_v35, %v559_v34 }
 0x99f   :  { %568 = vrot.lane.b32.xlu1 %v566_v36, %s2637_s20 }
 0xa11   :  { %v569_v38 = vpop.permute.xlu1 %568 }
 0xa12   :  { %v571_v39 = vadd.f32 %v569_v38, %v561_v37 }
 0xa14   :  { %2559 = vtanh.f32 %v571_v39 }
 0xa1e   :  { %v2560_v40 = vpop.eup %2559 }
 0xa1f   :  { %574 = vrot.lane.b32.xlu0 %v2560_v40, %s2636_s19 }
 0xa91   :  { %v575_v41 = vpop.permute.xlu0 %574 }
 0xa92   :  { %v577_v42 = vmul.f32 %v575_v41, %v559_v34 }
 0xa94   :  { %580 = vrot.lane.b32.xlu1 %v577_v42, %s2637_s20 }
 0xb06   :  { %v581_v43 = vpop.permute.xlu1 %580 }
 0xb07   :  { %988 = vst.msk [vmem:[#allocation2 + $0x18] sm:$0xff] %vm46_vm0, %v581_v43  ;;  %2260 = vmatmul.mubr.msk.f32.vlgmr.msra.gmra.mrb[10].mxu0 %vm46_vm0, %v581_v43 }
 0xb08   :  { %2460 = vmatpush3.bf16.msra.mxu0 %v2694_v9  ;;  %2281 = vmatprep.mubr.msk.f32.mxu0 %vm2634_vm1, %v2635_v4 }
 0xb09   :  { %2461 = vmatprep.subr.bf16.mxu0 %v2633_v2 }
 0xb0c   :  { %2463 = vmatpush3.bf16.msra.mxu0 %v2707_v14 }
 0xb0d   :  { %2471 = vmatprep.subr.bf16.mxu0 %v2470_v19 }
 0xb0e   :  { %v1008_v30 = vld [vmem:[#allocation2 + $0x18] sm:$0xff] }
 0xbda   :  { %v650_v45 = vpop.f32.mrb[10].mxu0 }
 0xbdb   :  { %v654_v46 = vadd.f32 %v650_v45, %v158_v44  ;;  %v2261_v47 = vpop.f32.mrb[11].mxu0 }
 0xbdd   :  { %2561 = vtanh.f32 %v654_v46  ;;  %v655_v49 = vmul.f32 0.5, %v654_v46 }
 0xbdf   :  { %2563 = vtanh.f32 %v655_v49 }
 0xbe7   :  { %v2562_v48 = vpop.eup %2561 }
 0xbe8   :  { %662 = vrot.lane.b32.xlu0 %v2562_v48, %s2636_s19 }
 0xbe9   :  { %v2564_v50 = vpop.eup %2563 }
 0xbea   :  { %v657_v51 = vadd.f32 1.0, %v2564_v50 }
 0xbec   :  { %v658_v52 = vmul.f32 0.5, %v657_v51 }
 0xbee   :  { %v660_v55 = vmul.f32 %v658_v52, %v571_v39 }
 0xc5a   :  { %v663_v53 = vpop.permute.xlu0 %662 }
 0xc5b   :  { %v665_v54 = vmul.f32 %v663_v53, %v658_v52  ;;  %v2055_v53 = vld [vmem:[%s3040_s2 + $0x20] sm:$0xff] }
 0xc5d   :  { %667 = vrot.lane.b32.xlu1 %v665_v54, %s2637_s20  ;;  %v2056_v54 = vld [vmem:[%s3040_s2 + $0x28] sm:$0xff] }
 0xccf   :  { %v668_v56 = vpop.permute.xlu1 %667 }
 0xcd0   :  { %v670_v57 = vadd.f32 %v668_v56, %v660_v55  ;;  %v2883_v55 = vpack.c.bf16 %v2056_v54, %v2055_v53  ;;  %v2057_v56 = vld [vmem:[%s3040_s2 + $0x30] sm:$0xff] }
 0xcd2   :  { %2565 = vtanh.f32 %v670_v57 }
 0xcdc   :  { %v2566_v58 = vpop.eup %2565 }
 0xcdd   :  { %673 = vrot.lane.b32.xlu0 %v2566_v58, %s2636_s19 }
 0xd4f   :  { %v674_v59 = vpop.permute.xlu0 %673 }
 0xd50   :  { %v676_v60 = vmul.f32 %v674_v59, %v658_v52 }
 0xd52   :  { %679 = vrot.lane.b32.xlu1 %v676_v60, %s2637_s20 }
 0xdc4   :  { %v680_v61 = vpop.permute.xlu1 %679 }
 0xdc5   :  { %989 = vst.msk [vmem:[#allocation2 + $0x20] sm:$0xff] %vm46_vm0, %v680_v61  ;;  %2271 = vmatmul.mubr.msk.f32.vlgmr.msra.gmra.mrb[6].mxu1 %vm46_vm0, %v680_v61 }
 0xdc6   :  { %2466 = vmatpush3.bf16.msra.mxu1 %v2694_v9  ;;  %2292 = vmatprep.mubr.msk.f32.mxu1 %vm2634_vm1, %v2635_v4 }
 0xdc7   :  { %2467 = vmatprep.subr.bf16.mxu1 %v2633_v2 }
 0xdca   :  { %2469 = vmatpush3.bf16.msra.mxu1 %v2707_v14 }
 0xdcb   :  { %2478 = vmatprep.subr.bf16.mxu1 %v2633_v2 }
 0xdcc   :  { %v1009_v31 = vld [vmem:[#allocation2 + $0x20] sm:$0xff] }
 0xe98   :  { %v749_v3 = vpop.f32.mrb[6].mxu1 }
 0xe99   :  { %v753_v5 = vadd.f32 %v749_v3, %v163_v63  ;;  %v2272_v6 = vpop.f32.mrb[7].mxu1  ;;  %v173_v3 = vadd.f32 %v2781_v0, %v2731_v16 }
 0xe9b   :  { %2567 = vtanh.f32 %v753_v5  ;;  %v754_v9 = vmul.f32 0.5, %v753_v5 }
 0xe9d   :  { %2569 = vtanh.f32 %v754_v9  ;;  %v2919_v9 = vld [vmem:[%s3042_s3 + $0x1] ss:$0 sm:$0xff] }
 0xea5   :  { %v2568_v7 = vpop.eup %2567 }
 0xea6   :  { %761 = vrot.lane.b32.xlu0 %v2568_v7, %s2636_s19 }
 0xea7   :  { %v2570_v8 = vpop.eup %2569 }
 0xea8   :  { %v756_v10 = vadd.f32 1.0, %v2570_v8 }
 0xeaa   :  { %v757_v11 = vmul.f32 0.5, %v756_v10 }
 0xeac   :  { %v759_v14 = vmul.f32 %v757_v11, %v670_v57  ;;  %v2058_v57 = vld [vmem:[%s3040_s2 + $0x38] sm:$0xff] }
 0xead   :  { %v2893_v58 = vpack.c.bf16 %v2058_v57, %v2057_v56 }
 0xf18   :  { %v762_v12 = vpop.permute.xlu0 %761 }
 0xf19   :  { %v764_v13 = vmul.f32 %v762_v12, %v757_v11 }
 0xf1b   :  { %766 = vrot.lane.b32.xlu1 %v764_v13, %s2637_s20 }
 0xf8d   :  { %v767_v15 = vpop.permute.xlu1 %766 }
 0xf8e   :  { %v769_v17 = vadd.f32 %v767_v15, %v759_v14 }
 0xf90   :  { %2571 = vtanh.f32 %v769_v17 }
 0xf9a   :  { %v2572_v20 = vpop.eup %2571 }
 0xf9b   :  { %772 = vrot.lane.b32.xlu0 %v2572_v20, %s2636_s19 }
0x100d   :  { %v773_v21 = vpop.permute.xlu0 %772 }
0x100e   :  { %v775_v22 = vmul.f32 %v773_v21, %v757_v11 }
0x1010   :  { %778 = vrot.lane.b32.xlu1 %v775_v22, %s2637_s20 }
0x1082   :  { %v779_v26 = vpop.permute.xlu1 %778 }
0x1083   :  { %990 = vst.msk [vmem:[#allocation2 + $0x28] sm:$0xff] %vm46_vm0, %v779_v26  ;;  %2282 = vmatmul.mubr.msk.f32.vlgmr.msra.gmra.mrb[12].mxu0 %vm46_vm0, %v779_v26 }
0x1084   :  { %2473 = vmatpush3.bf16.msra.mxu0 %v2470_v19  ;;  %2303 = vmatprep.mubr.msk.f32.mxu0 %vm46_vm0, %v1005_v27 }
0x1085   :  { %2475 = vmatprep.subr.bf16.mxu0 %v2474_v25 }
0x1088   :  { %2477 = vmatpush3.bf16.msra.mxu0 %v2474_v25 }
0x1089   :  { %2490 = vmatprep.subr.bf16.mxu0 %v2633_v2 }
0x108a   :  { %v1010_v32 = vld [vmem:[#allocation2 + $0x28] sm:$0xff] }
0x108b   :  { %2304 = vmatmul.mubr.msk.f32.vlgmr.msra.gmra.mrb[14].mxu0 %vm46_vm0, %v1006_v28 }
0x108c   :  { %2306 = vmatprep.mubr.msk.f32.mxu0 %vm46_vm0, %v1007_v29  ;;  %2492 = vmatpush3.bf16.msra.mxu0 %v2883_v55 }
0x108d   :  { %2493 = vmatprep.subr.bf16.mxu0 %v2633_v2 }
0x108f   :  { %2307 = vmatmul.mubr.msk.f32.gmra.mrb[16].mxu0 %vm46_vm0, %v1008_v30 }
0x1090   :  { %2309 = vmatprep.mubr.msk.f32.mxu0 %vm46_vm0, %v1009_v31  ;;  %2495 = vmatpush3.bf16.msra.mxu0 %v2893_v58 }
0x1091   :  { %2502 = vmatprep.subr.bf16.mxu0 %v2633_v2 }
0x1093   :  { %2310 = vmatmul.mubr.msk.f32.gmra.mrb[18].mxu0 %vm46_vm0, %v1010_v32 }
0x1156   :  { %v848_v34 = vpop.f32.mrb[12].mxu0 }
0x1157   :  { %v852_v35 = vadd.f32 %v848_v34, %v168_v33  ;;  %v2283_v36 = vpop.f32.mrb[13].mxu0 }
0x1159   :  { %2573 = vtanh.f32 %v852_v35  ;;  %v853_v44 = vmul.f32 0.5, %v852_v35 }
0x115b   :  { %2575 = vtanh.f32 %v853_v44 }
0x115e   :  { %v2861_v37 = vpop.f32.mrb[14].mxu0 }
0x115f   :  { %v1109_v38 = vpop.f32.mrb[15].mxu0 }
0x1160   :  { %v1110_v8 = vadd.f32 %v2919_v9, %v1109_v38 }
0x1162   :  { %v2863_v39 = vpop.f32.mrb[16].mxu0 }
0x1163   :  { %v2574_v40 = vpop.eup %2573  ;;  %v2865_v41 = vpop.f32.mrb[17].mxu0 }
0x1164   :  { %860 = vrot.lane.b32.xlu0 %v2574_v40, %s2636_s19  ;;  %v1115_v40 = vadd.f32 %v2861_v37, %v2919_v9 }
0x1165   :  { %v2576_v1 = vpop.eup %2575 }
0x1166   :  { %v2868_v42 = vpop.f32.mrb[18].mxu0  ;;  %v855_v45 = vadd.f32 1.0, %v2576_v1 }
0x1167   :  { %v2870_v43 = vpop.f32.mrb[19].mxu0 }
0x1168   :  { %v856_v46 = vmul.f32 0.5, %v855_v45 }
0x116a   :  { %v858_v49 = vmul.f32 %v856_v46, %v769_v17 }
0x11d6   :  { %v861_v47 = vpop.permute.xlu0 %860 }
0x11d7   :  { %v863_v48 = vmul.f32 %v861_v47, %v856_v46 }
0x11d9   :  { %865 = vrot.lane.b32.xlu1 %v863_v48, %s2637_s20 }
0x124b   :  { %v866_v50 = vpop.permute.xlu1 %865 }
0x124c   :  { %v2873_v51 = vadd.f32 %v866_v50, %v858_v49 }
0x124e   :  { %2577 = vtanh.f32 %v2873_v51 }
0x1258   :  { %v2578_v52 = vpop.eup %2577 }
0x1259   :  { %871 = vrot.lane.b32.xlu0 %v2578_v52, %s2636_s19 }
0x12cb   :  { %v872_v59 = vpop.permute.xlu0 %871 }
0x12cc   :  { %v874_v60 = vmul.f32 %v872_v59, %v856_v46 }
0x12ce   :  { %877 = vrot.lane.b32.xlu1 %v874_v60, %s2637_s20 }
0x1340   :  { %v878_v61 = vpop.permute.xlu1 %877 }
0x1341   :  { %991 = vst.msk [vmem:[#allocation2 + $0x30] sm:$0xff] %vm46_vm0, %v878_v61  ;;  %2293 = vmatmul.mubr.msk.f32.vlgmr.msra.gmra.mrb[8].mxu1 %vm46_vm0, %v878_v61 }
0x1342   :  { %2480 = vmatpush3.bf16.msra.mxu1 %v2883_v55  ;;  %2323 = vmatprep.mubr.msk.f32.mxu1 %vm2634_vm1, %v2635_v4 }
0x1343   :  { %2481 = vmatprep.subr.bf16.mxu1 %v2633_v2 }
0x1346   :  { %2483 = vmatpush3.bf16.msra.mxu1 %v2893_v58 }
0x1347   :  { %2484 = vmatprep.subr.bf16.mxu1 %v2633_v2 }
0x1348   :  { %v1011_v63 = vld [vmem:[#allocation2 + $0x30] sm:$0xff] }
0x1349   :  { %2324 = vmatmul.mubr.f32.vlgmr.msra.gmra.mrb[10].mxu1 %v2635_v4  ;;  %2312 = vmatprep.mubr.msk.f32.mxu0 %vm46_vm0, %v1011_v63 }
0x134a   :  { %2486 = vmatpush3.bf16.msra.mxu1 %v2883_v55  ;;  %2334 = vmatprep.mubr.msk.f32.mxu1 %vm2634_vm1, %v2635_v4 }
0x134b   :  { %2487 = vmatprep.subr.bf16.mxu1 %v2633_v2 }
0x134e   :  { %2489 = vmatpush3.bf16.msra.mxu1 %v2893_v58 }
0x134f   :  { %2496 = vmatprep.subr.bf16.mxu1 %v2633_v2 }
0x1414   :  { %v947_v5 = vpop.f32.mrb[8].mxu1 }
0x1415   :  { %v951_v6 = vadd.f32 %v947_v5, %v173_v3  ;;  %v2294_v7 = vpop.f32.mrb[9].mxu1 }
0x1417   :  { %v952_v23 = vmul.f32 0.5, %v951_v6 }
0x141c   :  { %v1223_v10 = vpop.f32.mrb[10].mxu1 }
0x141d   :  { %v1227_v11 = vadd.f32 %v1223_v10, %v1110_v8  ;;  %v2325_v12 = vpop.f32.mrb[11].mxu1 }
0x141f   :  { %2579 = vtanh.f32 %v1227_v11  ;;  %v1228_v14 = vmul.f32 0.5, %v1227_v11 }
0x1421   :  { %2581 = vtanh.f32 %v1228_v14 }
0x1429   :  { %v2580_v13 = vpop.eup %2579 }
0x142a   :  { %1235 = vrot.lane.b32.xlu0 %v2580_v13, %s2636_s19 }
0x142b   :  { %v2582_v16 = vpop.eup %2581 }
0x142c   :  { %v1230_v0 = vadd.f32 1.0, %v2582_v16 }
0x142e   :  { %v1231_v15 = vmul.f32 0.5, %v1230_v0 }
0x1430   :  { %v1233_v18 = vmul.f32 0.0, %v1231_v15 }
0x149c   :  { %v1236_v17 = vpop.permute.xlu0 %1235 }
0x149d   :  { %v1238_v62 = vmul.f32 %v1236_v17, %v1231_v15 }
0x149f   :  { %1240 = vrot.lane.b32.xlu1 %v1238_v62, %s2637_s20 }
0x1511   :  { %v1241_v19 = vpop.permute.xlu1 %1240 }
0x1512   :  { %v1243_v20 = vadd.f32 %v1241_v19, %v1233_v18 }
0x1514   :  { %2583 = vtanh.f32 %v1243_v20 }
0x1515   :  { %2585 = vtanh.f32 %v951_v6  ;;  %v1120_v6 = vadd.f32 %v2919_v9, %v2865_v41 }
0x1516   :  { %2587 = vtanh.f32 %v952_v23 }
0x151e   :  { %v2584_v21 = vpop.eup %2583 }
0x151f   :  { %1246 = vrot.lane.b32.xlu0 %v2584_v21, %s2636_s19  ;;  %v2586_v22 = vpop.eup %2585 }
0x1520   :  { %v2588_v24 = vpop.eup %2587 }
0x1521   :  { %v954_v25 = vadd.f32 1.0, %v2588_v24 }
0x1523   :  { %959 = vrot.lane.b32.xlu0 %v2586_v22, %s2636_s19  ;;  %v955_v28 = vmul.f32 0.5, %v954_v25  ;;  %v1125_v22 = vadd.f32 %v2863_v39, %v2919_v9 }
0x1525   :  { %v957_v32 = vmul.f32 %v955_v28, %v2873_v51 }
0x1591   :  { %v1247_v26 = vpop.permute.xlu0 %1246 }
0x1592   :  { %v1249_v27 = vmul.f32 %v1247_v26, %v1231_v15 }
0x1594   :  { %1252 = vrot.lane.b32.xlu1 %v1249_v27, %s2637_s20 }
0x1595   :  { %v960_v29 = vpop.permute.xlu0 %959 }
0x1596   :  { %v962_v30 = vmul.f32 %v960_v29, %v955_v28 }
0x1598   :  { %964 = vrot.lane.b32.xlu0 %v962_v30, %s2637_s20 }
0x1606   :  { %v1253_v31 = vpop.permute.xlu1 %1252 }
0x1607   :  { %2335 = vmatmul.mubr.msk.f32.vlgmr.msra.gmra.mrb[12].mxu1 %vm46_vm0, %v1253_v31 }
0x1608   :  { %2498 = vmatpush3.bf16.msra.mxu1 %v2883_v55  ;;  %2356 = vmatprep.mubr.msk.f32.mxu1 %vm2634_vm1, %v2635_v4 }
0x1609   :  { %2499 = vmatprep.subr.bf16.mxu1 %v2633_v2 }
0x160a   :  { %v965_v33 = vpop.permute.xlu0 %964 }
0x160b   :  { %v967_v34 = vadd.f32 %v965_v33, %v957_v32 }
0x160c   :  { %2501 = vmatpush3.bf16.msra.mxu1 %v2893_v58 }
0x160d   :  { %2589 = vtanh.f32 %v967_v34  ;;  %2508 = vmatprep.subr.bf16.mxu1 %v2633_v2 }
0x1617   :  { %v2590_v35 = vpop.eup %2589 }
0x1618   :  { %970 = vrot.lane.b32.xlu0 %v2590_v35, %s2636_s19 }
0x168a   :  { %v971_v36 = vpop.permute.xlu0 %970 }
0x168b   :  { %v973_v38 = vmul.f32 %v971_v36, %v955_v28 }
0x168d   :  { %975 = vrot.lane.b32.xlu0 %v973_v38, %s2637_s20 }
0x16da   :  { %v1322_v44 = vpop.f32.mrb[12].mxu1 }
0x16db   :  { %v1326_v1 = vadd.f32 %v1322_v44, %v1115_v40  ;;  %v2336_v45 = vpop.f32.mrb[13].mxu1  ;;  %v1130_v44 = vadd.f32 %v2919_v9, %v2870_v43 }
0x16dd   :  { %2591 = vtanh.f32 %v1326_v1  ;;  %v1327_v49 = vmul.f32 0.5, %v1326_v1 }
0x16df   :  { %2593 = vtanh.f32 %v1327_v49 }
0x16e7   :  { %v2592_v46 = vpop.eup %2591 }
0x16e8   :  { %1334 = vrot.lane.b32.xlu1 %v2592_v46, %s2636_s19 }
0x16e9   :  { %v2594_v50 = vpop.eup %2593 }
0x16ea   :  { %v1329_v37 = vadd.f32 1.0, %v2594_v50 }
0x16ec   :  { %v1330_v51 = vmul.f32 0.5, %v1329_v37 }
0x16ee   :  { %v1332_v54 = vmul.f32 %v1330_v51, %v1243_v20 }
0x16ff   :  { %v976_v47 = vpop.permute.xlu0 %975 }
0x1700   :  { %992 = vst.msk [vmem:[#allocation2 + $0x38] sm:$0xff] %vm46_vm0, %v976_v47 }
0x1707   :  { %v1012_v48 = vld [vmem:[#allocation2 + $0x38] sm:$0xff] }
0x1708   :  { %2313 = vmatmul.mubr.msk.f32.gmra.mrb[20].mxu0 %vm46_vm0, %v1012_v48 }
0x1709   :  { %2345 = vmatprep.mubr.msk.f32.mxu0 %vm2634_vm1, %v2635_v4 }
0x175a   :  { %v1335_v52 = vpop.permute.xlu1 %1334 }
0x175b   :  { %v1337_v53 = vmul.f32 %v1335_v52, %v1330_v51 }
0x175d   :  { %1339 = vrot.lane.b32.xlu1 %v1337_v53, %s2637_s20 }
0x17cf   :  { %v1340_v56 = vpop.permute.xlu1 %1339 }
0x17d0   :  { %v1342_v57 = vadd.f32 %v1340_v56, %v1332_v54 }
0x17d2   :  { %2595 = vtanh.f32 %v1342_v57 }
0x17db   :  { %v2946_v59 = vpop.f32.mrb[20].mxu0 }
0x17dc   :  { %v2596_v60 = vpop.eup %2595  ;;  %v2948_v61 = vpop.f32.mrb[21].mxu0 }
0x17dd   :  { %1345 = vrot.lane.b32.xlu1 %v2596_v60, %s2636_s19 }
0x184f   :  { %v1346_v63 = vpop.permute.xlu1 %1345 }
0x1850   :  { %v1348_v3 = vmul.f32 %v1346_v63, %v1330_v51 }
0x1852   :  { %1351 = vrot.lane.b32.xlu1 %v1348_v3, %s2637_s20  ;;  %v1135_v3 = vadd.f32 %v2868_v42, %v2919_v9 }
0x18c4   :  { %v1352_v5 = vpop.permute.xlu1 %1351 }
0x18c5   :  { %2346 = vmatmul.mubr.msk.f32.vlgmr.msra.gmra.mrb[22].mxu0 %vm46_vm0, %v1352_v5 }
0x18c6   :  { %2504 = vmatpush3.bf16.msra.mxu0 %v2883_v55  ;;  %2367 = vmatprep.mubr.msk.f32.mxu0 %vm2634_vm1, %v2635_v4 }
0x18c7   :  { %2505 = vmatprep.subr.bf16.mxu0 %v2633_v2 }
0x18ca   :  { %2507 = vmatpush3.bf16.msra.mxu0 %v2893_v58 }
0x18cb   :  { %2514 = vmatprep.subr.bf16.mxu0 %v2633_v2 }
0x1998   :  { %v1421_v7 = vpop.f32.mrb[22].mxu0 }
0x1999   :  { %v1425_v8 = vadd.f32 %v1421_v7, %v1120_v6  ;;  %v2347_v10 = vpop.f32.mrb[23].mxu0 }
0x199b   :  { %2597 = vtanh.f32 %v1425_v8  ;;  %v1426_v12 = vmul.f32 0.5, %v1425_v8 }
0x199d   :  { %2599 = vtanh.f32 %v1426_v12 }
0x19a5   :  { %v2598_v11 = vpop.eup %2597 }
0x19a6   :  { %1433 = vrot.lane.b32.xlu0 %v2598_v11, %s2636_s19 }
0x19a7   :  { %v2600_v13 = vpop.eup %2599 }
0x19a8   :  { %v1428_v14 = vadd.f32 1.0, %v2600_v13 }
0x19aa   :  { %v1429_v16 = vmul.f32 0.5, %v1428_v14 }
0x19ac   :  { %v1431_v17 = vmul.f32 %v1429_v16, %v1342_v57 }
0x1a18   :  { %v1434_v0 = vpop.permute.xlu0 %1433 }
0x1a19   :  { %v1436_v15 = vmul.f32 %v1434_v0, %v1429_v16 }
0x1a1b   :  { %1438 = vrot.lane.b32.xlu1 %v1436_v15, %s2637_s20 }
0x1a8d   :  { %v1439_v62 = vpop.permute.xlu1 %1438 }
0x1a8e   :  { %v1441_v18 = vadd.f32 %v1439_v62, %v1431_v17 }
0x1a90   :  { %2601 = vtanh.f32 %v1441_v18 }
0x1a9a   :  { %v2602_v41 = vpop.eup %2601 }
0x1a9b   :  { %1444 = vrot.lane.b32.xlu0 %v2602_v41, %s2636_s19 }
0x1b0d   :  { %v1445_v19 = vpop.permute.xlu0 %1444 }
0x1b0e   :  { %v1447_v20 = vmul.f32 %v1445_v19, %v1429_v16 }
0x1b10   :  { %1450 = vrot.lane.b32.xlu1 %v1447_v20, %s2637_s20 }
0x1b82   :  { %v1451_v21 = vpop.permute.xlu1 %1450 }
0x1b83   :  { %2357 = vmatmul.mubr.msk.f32.vlgmr.msra.gmra.mrb[14].mxu1 %vm46_vm0, %v1451_v21 }
0x1b84   :  { %2510 = vmatpush3.bf16.msra.mxu1 %v2883_v55  ;;  %2378 = vmatprep.mubr.msk.f32.mxu1 %vm2634_vm1, %v2635_v4 }
0x1b85   :  { %2511 = vmatprep.subr.bf16.mxu1 %v2633_v2 }
0x1b88   :  { %2513 = vmatpush3.bf16.msra.mxu1 %v2893_v58 }
0x1b89   :  { %2520 = vmatprep.subr.bf16.mxu1 %v2633_v2 }
0x1c56   :  { %v1520_v23 = vpop.f32.mrb[14].mxu1 }
0x1c57   :  { %v1524_v24 = vadd.f32 %v1520_v23, %v1125_v22  ;;  %v2358_v25 = vpop.f32.mrb[15].mxu1 }
0x1c59   :  { %2603 = vtanh.f32 %v1524_v24  ;;  %v1525_v27 = vmul.f32 0.5, %v1524_v24 }
0x1c5b   :  { %2605 = vtanh.f32 %v1525_v27 }
0x1c63   :  { %v2604_v26 = vpop.eup %2603 }
0x1c64   :  { %1532 = vrot.lane.b32.xlu0 %v2604_v26, %s2636_s19 }
0x1c65   :  { %v2606_v28 = vpop.eup %2605 }
0x1c66   :  { %v1527_v29 = vadd.f32 1.0, %v2606_v28 }
0x1c68   :  { %v1528_v30 = vmul.f32 0.5, %v1527_v29 }
0x1c6a   :  { %v1530_v33 = vmul.f32 %v1528_v30, %v1441_v18  ;;  %v1140_v18 = vadd.f32 %v2919_v9, %v2948_v61 }
0x1cd6   :  { %v1533_v31 = vpop.permute.xlu0 %1532 }
0x1cd7   :  { %v1535_v32 = vmul.f32 %v1533_v31, %v1528_v30 }
0x1cd9   :  { %1537 = vrot.lane.b32.xlu1 %v1535_v32, %s2637_s20 }
0x1d4b   :  { %v1538_v34 = vpop.permute.xlu1 %1537 }
0x1d4c   :  { %v1540_v35 = vadd.f32 %v1538_v34, %v1530_v33  ;;  %v1145_v33 = vadd.f32 %v2946_v59, %v2919_v9  ;;  %v1943_v9 = vld [vmem:[%s3043_s4] sm:$0xff]  ;;  %v1944_v59 = vld [vmem:[%s3043_s4 + $0x8] sm:$0xff] }
0x1d4e   :  { %2607 = vtanh.f32 %v1540_v35 }
0x1d58   :  { %v2608_v39 = vpop.eup %2607 }
0x1d59   :  { %1543 = vrot.lane.b32.xlu0 %v2608_v39, %s2636_s19 }
0x1dcb   :  { %v1544_v36 = vpop.permute.xlu0 %1543 }
0x1dcc   :  { %v1546_v38 = vmul.f32 %v1544_v36, %v1528_v30 }
0x1dce   :  { %1549 = vrot.lane.b32.xlu1 %v1546_v38, %s2637_s20 }
0x1e40   :  { %v1550_v40 = vpop.permute.xlu1 %1549 }
0x1e41   :  { %2368 = vmatmul.mubr.msk.f32.vlgmr.msra.gmra.mrb[24].mxu0 %vm46_vm0, %v1550_v40 }
0x1e42   :  { %2516 = vmatpush3.bf16.msra.mxu0 %v2883_v55  ;;  %2389 = vmatprep.mubr.msk.f32.mxu0 %vm2634_vm1, %v2635_v4 }
0x1e43   :  { %2517 = vmatprep.subr.bf16.mxu0 %v2633_v2 }
0x1e46   :  { %2519 = vmatpush3.bf16.msra.mxu0 %v2893_v58 }
0x1e47   :  { %2526 = vmatprep.subr.bf16.mxu0 %v2633_v2 }
0x1f14   :  { %v1619_v1 = vpop.f32.mrb[24].mxu0 }
0x1f15   :  { %v1623_v45 = vadd.f32 %v1619_v1, %v1130_v44  ;;  %v2369_v46 = vpop.f32.mrb[25].mxu0 }
0x1f17   :  { %2609 = vtanh.f32 %v1623_v45  ;;  %v1624_v48 = vmul.f32 0.5, %v1623_v45 }
0x1f19   :  { %2611 = vtanh.f32 %v1624_v48 }
0x1f21   :  { %v2610_v47 = vpop.eup %2609 }
0x1f22   :  { %1631 = vrot.lane.b32.xlu0 %v2610_v47, %s2636_s19 }
0x1f23   :  { %v2612_v49 = vpop.eup %2611 }
0x1f24   :  { %v1626_v50 = vadd.f32 1.0, %v2612_v49 }
0x1f26   :  { %v1627_v37 = vmul.f32 0.5, %v1626_v50  ;;  %v1945_v50 = vld [vmem:[%s3043_s4 + $0x10] sm:$0xff] }
0x1f28   :  { %v1629_v53 = vmul.f32 %v1627_v37, %v1540_v35 }
0x1f94   :  { %v1632_v51 = vpop.permute.xlu0 %1631 }
0x1f95   :  { %v1634_v52 = vmul.f32 %v1632_v51, %v1627_v37  ;;  %v1946_v51 = vld [vmem:[%s3043_s4 + $0x18] sm:$0xff] }
0x1f97   :  { %1636 = vrot.lane.b32.xlu1 %v1634_v52, %s2637_s20  ;;  %v2530_v52 = vpack.c.bf16 %v1946_v51, %v1945_v50 }
0x2009   :  { %v1637_v54 = vpop.permute.xlu1 %1636 }
0x200a   :  { %v1639_v56 = vadd.f32 %v1637_v54, %v1629_v53 }
0x200c   :  { %2613 = vtanh.f32 %v1639_v56 }
0x2016   :  { %v2614_v43 = vpop.eup %2613 }
0x2017   :  { %1642 = vrot.lane.b32.xlu0 %v2614_v43, %s2636_s19 }
0x2089   :  { %v1643_v57 = vpop.permute.xlu0 %1642 }
0x208a   :  { %v1645_v60 = vmul.f32 %v1643_v57, %v1627_v37  ;;  %v2527_v37 = vpack.c.bf16 %v1944_v59, %v1943_v9  ;;  %v2076_v57 = vld [vmem:[%s3044_s5] ss:$0 sm:$0xff] }
0x208c   :  { %1648 = vrot.lane.b32.xlu1 %v1645_v60, %s2637_s20 }
0x20fe   :  { %v1649_v63 = vpop.permute.xlu1 %1648 }
0x20ff   :  { %2379 = vmatmul.mubr.msk.f32.vlgmr.msra.gmra.mrb[16].mxu1 %vm46_vm0, %v1649_v63 }
0x2100   :  { %2522 = vmatpush3.bf16.msra.mxu1 %v2883_v55  ;;  %2400 = vmatprep.mubr.msk.f32.mxu1 %vm2634_vm1, %v2635_v4 }
0x2101   :  { %2523 = vmatprep.subr.bf16.mxu1 %v2633_v2 }
0x2104   :  { %2525 = vmatpush3.bf16.msra.mxu1 %v2893_v58 }
0x21d2   :  { %v1718_v5 = vpop.f32.mrb[16].mxu1 }
0x21d3   :  { %v1722_v6 = vadd.f32 %v1718_v5, %v1135_v3  ;;  %v2380_v7 = vpop.f32.mrb[17].mxu1 }
0x21d5   :  { %2615 = vtanh.f32 %v1722_v6  ;;  %v1723_v10 = vmul.f32 0.5, %v1722_v6 }
0x21d7   :  { %2617 = vtanh.f32 %v1723_v10 }
0x21df   :  { %v2616_v8 = vpop.eup %2615 }
0x21e0   :  { %1730 = vrot.lane.b32.xlu0 %v2616_v8, %s2636_s19 }
0x21e1   :  { %v2618_v55 = vpop.eup %2617 }
0x21e2   :  { %v1725_v11 = vadd.f32 1.0, %v2618_v55 }
0x21e4   :  { %v1726_v12 = vmul.f32 0.5, %v1725_v11 }
0x21e6   :  { %v1728_v58 = vmul.f32 %v1726_v12, %v1639_v56 }
0x2252   :  { %v1731_v13 = vpop.permute.xlu0 %1730 }
0x2253   :  { %v1733_v14 = vmul.f32 %v1731_v13, %v1726_v12 }
0x2255   :  { %1735 = vrot.lane.b32.xlu1 %v1733_v14, %s2637_s20 }
0x22c7   :  { %v1736_v16 = vpop.permute.xlu1 %1735 }
0x22c8   :  { %v1738_v0 = vadd.f32 %v1736_v16, %v1728_v58 }
0x22ca   :  { %2619 = vtanh.f32 %v1738_v0 }
0x22d4   :  { %v2620_v42 = vpop.eup %2619 }
0x22d5   :  { %1741 = vrot.lane.b32.xlu0 %v2620_v42, %s2636_s19 }
0x2347   :  { %v1742_v15 = vpop.permute.xlu0 %1741 }
0x2348   :  { %v1744_v17 = vmul.f32 %v1742_v15, %v1726_v12 }
0x234a   :  { %1747 = vrot.lane.b32.xlu1 %v1744_v17, %s2637_s20 }
0x23bc   :  { %v1748_v62 = vpop.permute.xlu1 %1747 }
0x23bd   :  { %2390 = vmatmul.mubr.msk.f32.vlgmr.msra.gmra.mrb[26].mxu0 %vm46_vm0, %v1748_v62 }
0x23be   :  { %2411 = vmatprep.mubr.msk.f32.mxu0 %vm2634_vm1, %v2635_v4  ;;  %2528 = vmatpush3.bf16.msra.mxu0 %v2527_v37 }
0x23bf   :  { %2529 = vmatprep.subr.bf16.mxu0 %v2633_v2 }
0x23c2   :  { %2531 = vmatpush3.bf16.msra.mxu0 %v2530_v52 }
0x2490   :  { %v1817_v41 = vpop.f32.mrb[26].mxu0 }
0x2491   :  { %v1821_v19 = vadd.f32 %v1817_v41, %v1140_v18  ;;  %v2391_v20 = vpop.f32.mrb[27].mxu0 }
0x2493   :  { %2621 = vtanh.f32 %v1821_v19  ;;  %v1822_v22 = vmul.f32 0.5, %v1821_v19 }
0x2495   :  { %2623 = vtanh.f32 %v1822_v22 }
0x249d   :  { %v2622_v21 = vpop.eup %2621 }
0x249e   :  { %1829 = vrot.lane.b32.xlu0 %v2622_v21, %s2636_s19 }
0x249f   :  { %v2624_v23 = vpop.eup %2623 }
0x24a0   :  { %v1824_v24 = vadd.f32 1.0, %v2624_v23 }
0x24a2   :  { %v1825_v25 = vmul.f32 0.5, %v1824_v24 }
0x24a4   :  { %v1827_v4 = vmul.f32 %v1825_v25, %v1738_v0 }
0x2510   :  { %v1830_v26 = vpop.permute.xlu0 %1829 }
0x2511   :  { %v1832_v27 = vmul.f32 %v1830_v26, %v1825_v25 }
0x2513   :  { %1834 = vrot.lane.b32.xlu1 %v1832_v27, %s2637_s20 }
0x2585   :  { %v1835_v28 = vpop.permute.xlu1 %1834 }
0x2586   :  { %v1837_v29 = vadd.f32 %v1835_v28, %v1827_v4 }
0x2588   :  { %2625 = vtanh.f32 %v1837_v29 }
0x2592   :  { %v2626_v61 = vpop.eup %2625 }
0x2593   :  { %1840 = vrot.lane.b32.xlu0 %v2626_v61, %s2636_s19 }
0x2605   :  { %v1841_v30 = vpop.permute.xlu0 %1840 }
0x2606   :  { %v1843_v31 = vmul.f32 %v1841_v30, %v1825_v25 }
0x2608   :  { %1846 = vrot.lane.b32.xlu1 %v1843_v31, %s2637_s20 }
0x267a   :  { %v1847_v32 = vpop.permute.xlu1 %1846 }
0x267b   :  { %2401 = vmatmul.mubr.msk.f32.vlgmr.msra.gmra.mrb[18].mxu1 %vm46_vm0, %v1847_v32 }
0x274e   :  { %v1916_v34 = vpop.f32.mrb[18].mxu1 }
0x274f   :  { %v1920_v35 = vadd.f32 %v1916_v34, %v1145_v33  ;;  %v2402_v39 = vpop.f32.mrb[19].mxu1 }
0x2751   :  { %2627 = vtanh.f32 %v1920_v35  ;;  %v1921_v38 = vmul.f32 0.5, %v1920_v35 }
0x2753   :  { %2629 = vtanh.f32 %v1921_v38 }
0x275b   :  { %v2628_v36 = vpop.eup %2627 }
0x275c   :  { %1928 = vrot.lane.b32.xlu0 %v2628_v36, %s2636_s19 }
0x275d   :  { %v2630_v40 = vpop.eup %2629 }
0x275e   :  { %v1923_v44 = vadd.f32 1.0, %v2630_v40 }
0x2760   :  { %v1924_v1 = vmul.f32 0.5, %v1923_v44 }
0x2762   :  { %v1926_v47 = vmul.f32 %v1924_v1, %v1837_v29 }
0x27ce   :  { %v1929_v45 = vpop.permute.xlu0 %1928 }
0x27cf   :  { %v1931_v46 = vmul.f32 %v1929_v45, %v1924_v1 }
0x27d1   :  { %1933 = vrot.lane.b32.xlu1 %v1931_v46, %s2637_s20 }
0x2843   :  { %v1934_v48 = vpop.permute.xlu1 %1933 }
0x2844   :  { %v1936_v49 = vadd.f32 %v1934_v48, %v1926_v47 }
0x2846   :  { %2631 = vtanh.f32 %v1936_v49 }
0x2850   :  { %v2632_v53 = vpop.eup %2631 }
0x2851   :  { %1939 = vrot.lane.b32.xlu0 %v2632_v53, %s2636_s19 }
0x28c3   :  { %v1940_v54 = vpop.permute.xlu0 %1939 }
0x28c4   :  { %v1942_v56 = vmul.f32 %v1940_v54, %v1924_v1 }
0x28c6   :  { %1955 = vrot.lane.b32.xlu1 %v1942_v56, %s2637_s20 }
0x2938   :  { %v1956_v43 = vpop.permute.xlu1 %1955 }
0x2939   :  { %2412 = vmatmul.mubr.msk.f32.vlgmr.msra.gmra.mrb[28].mxu0 %vm46_vm0, %v1956_v43 }
0x2a0c   :  { %v2025_v60 = vpop.f32.mrb[28].mxu0 }
0x2a0d   :  { %v2026_v63 = vadd.f32 %v2076_v57, %v2025_v60  ;;  %v2413_v3 = vpop.f32.mrb[29].mxu0 }
0x2a0f   :  { %2030 = vst.msk [vmem:[%s3045_s6] sm:$0xff] %vm2029_vm2, %v2026_v63 }

</bundles_post_ra>
